<compile_context>
chip_gen: v5e
topology: v5e:2x2
jax: 0.10.0
libtpu: 0.0.40
codegen_flags: <defaults>
</compile_context>

<pallas_src>
import jax
import jax.numpy as jnp
from jax.experimental import pallas as pl
from jax.experimental.pallas import tpu as pltpu

LANES = 128  # TPU lane width; channel axes are padded to this inside the kernel.


def _fused_conv_kernel(xcol_ref, w1_ref, b1_ref, w2_ref, rmask_ref, o_ref):
    """conv1 + bias + relu -> conv2 + relu + 42, fused, one matmul per conv.

    xcol_ref  : (R, K*Cin)   im2col'd input rows, R = N * (L + 2*pad)
    w1_ref    : (K*Cin, CP)  conv1 weights, taps flattened, channels padded
    b1_ref    : (1, CP)      conv1 bias, channels padded
    w2_ref    : (K*CP, CP)   conv2 weights, taps flattened, channels padded
    rmask_ref : (R, 1)       1.0 on valid rows, 0.0 on per-sample pad rows
    o_ref     : (R, CP)      lane-dense output (wrapper slices rows/channels)
    """
    R, CP = o_ref.shape
    K = w2_ref.shape[0] // CP
    pad = (K - 1) // 2

    # ---- conv1: single (R, K*Cin) @ (K*Cin, CP) MXU matmul -----------------
    h = jnp.dot(xcol_ref[...], w1_ref[...], preferred_element_type=jnp.float32)
    # bias + relu, then zero the per-sample pad rows: they act as conv2's zero
    # padding.  Padded channel columns are already exactly zero (zero weights,
    # zero bias, relu(0) = 0).
    h = jnp.maximum(h + b1_ref[...], 0.0) * rmask_ref[...]

    # ---- conv2: lane-aligned in-kernel im2col + single matmul --------------
    zrows = jnp.zeros((pad, CP), jnp.float32)
    h_ext = jnp.concatenate([zrows, h, zrows], axis=0)           # (R + K - 1, CP)
    # Each tap is a full 128-lane slab -> concat offsets are multiples of 128.
    h_cols = jnp.concatenate(
        [h_ext[k:k + R, :] for k in range(K)], axis=1)           # (R, K*CP)
    out = jnp.dot(h_cols, w2_ref[...], preferred_element_type=jnp.float32)

    o_ref[...] = (jnp.maximum(out, 0.0) + 42.0).astype(o_ref.dtype)


def torch_model_forward(x_ncl, w1, b1, w2):
    """x_ncl: (N, Cin, L) float32.  Returns (N, C2, L) float32."""
    N, Cin, L = x_ncl.shape
    K, _, C1 = w1.shape
    _, _, C2 = w2.shape
    pad = (K - 1) // 2
    Lp = L + 2 * pad            # per-sample padded length (conv2's row grid)
    R = N * Lp                  # rows processed by the kernel
    CP = LANES

    # ---- single pre-kernel pass: transpose + pad + im2col (fused by XLA) ---
    x_nlc = jnp.transpose(x_ncl, (0, 2, 1))                        # (N, L, Cin)
    x_dp = jnp.pad(x_nlc, ((0, 0), (2 * pad, 2 * pad), (0, 0)))    # (N, L+4p, Cin)
    xcol = jnp.stack([x_dp[:, k:k + Lp, :] for k in range(K)], axis=2)
    xcol = xcol.reshape(R, K * Cin)                                # (R, K*Cin)

    # ---- parameters: flatten taps into the contraction, pad channels to 128
    w1_flat = jnp.pad(w1.reshape(K * Cin, C1), ((0, 0), (0, CP - C1)))
    b1_pad = jnp.pad(b1.reshape(1, C1), ((0, 0), (0, CP - C1)))
    w2_big = jnp.pad(w2, ((0, 0), (0, CP - C1), (0, CP - C2))).reshape(K * CP, CP)

    # 1.0 on the L real positions of each sample, 0.0 on its pad rows.
    pos = jnp.arange(Lp)
    rmask = ((pos >= pad) & (pos < pad + L)).astype(jnp.float32)
    rmask = jnp.tile(rmask, (N,)).reshape(R, 1)

    out_rc = pl.pallas_call(
        _fused_conv_kernel,
        out_shape=jax.ShapeDtypeStruct((R, CP), jnp.float32),
        grid_spec=pltpu.PrefetchScalarGridSpec(
            num_scalar_prefetch=0,
            grid=(1,),   # whole (tiny) problem in one step: grid is a serial loop on 1-TC chips
            in_specs=[
                pl.BlockSpec((R, K * Cin), lambda i: (0, 0)),
                pl.BlockSpec((K * Cin, CP), lambda i: (0, 0)),
                pl.BlockSpec((1, CP), lambda i: (0, 0)),
                pl.BlockSpec((K * CP, CP), lambda i: (0, 0)),
                pl.BlockSpec((R, 1), lambda i: (0, 0)),
            ],
            out_specs=pl.BlockSpec((R, CP), lambda i: (0, 0)),
        ),
    )(xcol, w1_flat, b1_pad, w2_big, rmask)

    # Drop pad rows / pad channels, back to PyTorch's NCL layout.
    out_nlc = out_rc.reshape(N, Lp, CP)[:, pad:pad + L, :C2]       # (N, L, C2)
    return jnp.transpose(out_nlc, (0, 2, 1))                       # (N, C2, L)


def _reference_forward(x_ncl, w1, b1, w2):
    """Pure-JAX reference using lax conv (NCW / OIW)."""
    K = w1.shape[0]
    pad = (K - 1) // 2
    # (K, Cin, Cout) -> (Cout, Cin, K)
    w1_oiw = jnp.transpose(w1, (2, 1, 0))
    w2_oiw = jnp.transpose(w2, (2, 1, 0))
    dn = ("NCH", "OIH", "NCH")
    y = jax.lax.conv_general_dilated(
        x_ncl, w1_oiw, (1,), [(pad, pad)], dimension_numbers=dn
    )
    y = jnp.maximum(y + b1.reshape(1, -1, 1), 0.0)
    y = jax.lax.conv_general_dilated(
        y, w2_oiw, (1,), [(pad, pad)], dimension_numbers=dn
    )
    return jnp.maximum(y, 0.0) + 42.0


if __name__ == "__main__":
    N, Cin, L = 2, 16, 32
    C1, C2, K = 24, 24, 9

    key = jax.random.PRNGKey(0)
    kx, kw1, kb1, kw2 = jax.random.split(key, 4)

    x = jax.random.normal(kx, (N, Cin, L), dtype=jnp.float32)
    # Deterministic synthetic parameters (shapes match the PyTorch module).
    w1 = jax.random.normal(kw1, (K, Cin, C1), dtype=jnp.float32) * 0.1
    b1 = jax.random.normal(kb1, (C1,), dtype=jnp.float32) * 0.1
    w2 = jax.random.normal(kw2, (K, C1, C2), dtype=jnp.float32) * 0.1

    out = torch_model_forward(x, w1, b1, w2)
    out = jax.block_until_ready(out)

    ref = _reference_forward(x, w1, b1, w2)
    assert out.shape == (N, C2, L)
    assert jnp.allclose(out, ref, atol=1e-4, rtol=1e-4)

    print("KERNEL_OK")
</pallas_src>

<mosaic_0001>
module attributes {stable_mosaic.version = 11 : i64} {
  func.func @_fused_conv_kernel(%arg0: i32, %arg1: memref<80x144xf32, #tpu.memory_space<vmem>>, %arg2: memref<144x128xf32, #tpu.memory_space<vmem>>, %arg3: memref<1x128xf32, #tpu.memory_space<vmem>>, %arg4: memref<1152x128xf32, #tpu.memory_space<vmem>>, %arg5: memref<80x1xf32, #tpu.memory_space<vmem>>, %arg6: memref<80x128xf32, #tpu.memory_space<vmem>>) attributes {dimension_semantics = [#tpu.dimension_semantics<arbitrary>], iteration_bounds = array<i64: 1>, scalar_prefetch = 0 : i64, scratch_operands = 0 : i64, tpu.core_type = #tpu.core_type<tc>, window_params = [{pipeline_mode = #tpu.pipeline_mode<synchronous>, transform_indices = @transform_0, window_bounds = array<i64: 80, 144>}, {pipeline_mode = #tpu.pipeline_mode<synchronous>, transform_indices = @transform_1, window_bounds = array<i64: 144, 128>}, {pipeline_mode = #tpu.pipeline_mode<synchronous>, transform_indices = @transform_2, window_bounds = array<i64: 1, 128>}, {pipeline_mode = #tpu.pipeline_mode<synchronous>, transform_indices = @transform_3, window_bounds = array<i64: 1152, 128>}, {pipeline_mode = #tpu.pipeline_mode<synchronous>, transform_indices = @transform_4, window_bounds = array<i64: 80, 1>}, {pipeline_mode = #tpu.pipeline_mode<synchronous>, transform_indices = @transform_5, window_bounds = array<i64: 80, 128>}]} {
    %c0 = arith.constant 0 : index
    %c0_0 = arith.constant 0 : index
    %0 = vector.load %arg1[%c0, %c0_0] : memref<80x144xf32, #tpu.memory_space<vmem>>, vector<80x144xf32>
    %c0_1 = arith.constant 0 : index
    %c0_2 = arith.constant 0 : index
    %1 = vector.load %arg2[%c0_1, %c0_2] : memref<144x128xf32, #tpu.memory_space<vmem>>, vector<144x128xf32>
    %cst = arith.constant dense<0.000000e+00> : vector<80x128xf32>
    %2 = tpu.matmul %0, %1, %cst {dimension_numbers = #tpu.dot_dimension_numbers<[1], [0], [0], [1], [0, 0, 1, 1], [], []>} : vector<80x144xf32>, vector<144x128xf32>, vector<80x128xf32> -> vector<80x128xf32>
    %c0_3 = arith.constant 0 : index
    %c0_4 = arith.constant 0 : index
    %3 = vector.load %arg3[%c0_3, %c0_4] : memref<1x128xf32, #tpu.memory_space<vmem>>, vector<1x128xf32>
    %4 = vector.broadcast %3 : vector<1x128xf32> to vector<80x128xf32>
    %5 = arith.addf %2, %4 : vector<80x128xf32>
    %cst_5 = arith.constant 0.000000e+00 : f32
    %6 = vector.broadcast %cst_5 : f32 to vector<80x128xf32>
    %7 = arith.maximumf %5, %6 : vector<80x128xf32>
    %c0_6 = arith.constant 0 : index
    %c0_7 = arith.constant 0 : index
    %8 = vector.load %arg5[%c0_6, %c0_7] : memref<80x1xf32, #tpu.memory_space<vmem>>, vector<80x1xf32>
    %9 = vector.broadcast %8 : vector<80x1xf32> to vector<80x128xf32>
    %10 = arith.mulf %7, %9 : vector<80x128xf32>
    %cst_8 = arith.constant 0.000000e+00 : f32
    %11 = vector.broadcast %cst_8 : f32 to vector<4x128xf32>
    %12 = tpu.concatenate %11, %10, %11 in 0 : vector<4x128xf32>, vector<80x128xf32>, vector<4x128xf32> -> vector<88x128xf32>
    %13 = vector.extract_strided_slice %12 {offsets = [0, 0], sizes = [80, 128], strides = [1, 1]} : vector<88x128xf32> to vector<80x128xf32>
    %14 = vector.extract_strided_slice %12 {offsets = [1, 0], sizes = [80, 128], strides = [1, 1]} : vector<88x128xf32> to vector<80x128xf32>
    %15 = vector.extract_strided_slice %12 {offsets = [2, 0], sizes = [80, 128], strides = [1, 1]} : vector<88x128xf32> to vector<80x128xf32>
    %16 = vector.extract_strided_slice %12 {offsets = [3, 0], sizes = [80, 128], strides = [1, 1]} : vector<88x128xf32> to vector<80x128xf32>
    %17 = vector.extract_strided_slice %12 {offsets = [4, 0], sizes = [80, 128], strides = [1, 1]} : vector<88x128xf32> to vector<80x128xf32>
    %18 = vector.extract_strided_slice %12 {offsets = [5, 0], sizes = [80, 128], strides = [1, 1]} : vector<88x128xf32> to vector<80x128xf32>
    %19 = vector.extract_strided_slice %12 {offsets = [6, 0], sizes = [80, 128], strides = [1, 1]} : vector<88x128xf32> to vector<80x128xf32>
    %20 = vector.extract_strided_slice %12 {offsets = [7, 0], sizes = [80, 128], strides = [1, 1]} : vector<88x128xf32> to vector<80x128xf32>
    %21 = vector.extract_strided_slice %12 {offsets = [8, 0], sizes = [80, 128], strides = [1, 1]} : vector<88x128xf32> to vector<80x128xf32>
    %22 = tpu.concatenate %13, %14, %15, %16, %17, %18, %19, %20, %21 in 1 : vector<80x128xf32>, vector<80x128xf32>, vector<80x128xf32>, vector<80x128xf32>, vector<80x128xf32>, vector<80x128xf32>, vector<80x128xf32>, vector<80x128xf32>, vector<80x128xf32> -> vector<80x1152xf32>
    %c0_9 = arith.constant 0 : index
    %c0_10 = arith.constant 0 : index
    %23 = vector.load %arg4[%c0_9, %c0_10] : memref<1152x128xf32, #tpu.memory_space<vmem>>, vector<1152x128xf32>
    %cst_11 = arith.constant dense<0.000000e+00> : vector<80x128xf32>
    %24 = tpu.matmul %22, %23, %cst_11 {dimension_numbers = #tpu.dot_dimension_numbers<[1], [0], [0], [1], [0, 0, 1, 1], [], []>} : vector<80x1152xf32>, vector<1152x128xf32>, vector<80x128xf32> -> vector<80x128xf32>
    %cst_12 = arith.constant 0.000000e+00 : f32
    %25 = vector.broadcast %cst_12 : f32 to vector<80x128xf32>
    %26 = arith.maximumf %24, %25 : vector<80x128xf32>
    %cst_13 = arith.constant 4.200000e+01 : f32
    %27 = vector.broadcast %cst_13 : f32 to vector<80x128xf32>
    %28 = arith.addf %26, %27 : vector<80x128xf32>
    %c0_14 = arith.constant 0 : index
    %c0_15 = arith.constant 0 : index
    %29 = vector.load %arg6[%c0_14, %c0_15] : memref<80x128xf32, #tpu.memory_space<vmem>>, vector<80x128xf32>
    tpu.vector_store %arg6[%c0_14, %c0_15], %28 {strides = array<i32>} : memref<80x128xf32, #tpu.memory_space<vmem>>, vector<80x128xf32>,
    return
  }
  func.func @transform_0(%arg0: i32) -> (i32, i32) {
    %c0_i32 = arith.constant 0 : i32
    %c0_i32_0 = arith.constant 0 : i32
    %c0_i32_1 = arith.constant 0 : i32
    return %c0_i32, %c0_i32_0 : i32, i32
  }
  func.func @transform_1(%arg0: i32) -> (i32, i32) {
    %c0_i32 = arith.constant 0 : i32
    %c0_i32_0 = arith.constant 0 : i32
    %c0_i32_1 = arith.constant 0 : i32
    return %c0_i32, %c0_i32_0 : i32, i32
  }
  func.func @transform_2(%arg0: i32) -> (i32, i32) {
    %c0_i32 = arith.constant 0 : i32
    %c0_i32_0 = arith.constant 0 : i32
    %c0_i32_1 = arith.constant 0 : i32
    return %c0_i32, %c0_i32_0 : i32, i32
  }
  func.func @transform_3(%arg0: i32) -> (i32, i32) {
    %c0_i32 = arith.constant 0 : i32
    %c0_i32_0 = arith.constant 0 : i32
    %c0_i32_1 = arith.constant 0 : i32
    return %c0_i32, %c0_i32_0 : i32, i32
  }
  func.func @transform_4(%arg0: i32) -> (i32, i32) {
    %c0_i32 = arith.constant 0 : i32
    %c0_i32_0 = arith.constant 0 : i32
    %c0_i32_1 = arith.constant 0 : i32
    return %c0_i32, %c0_i32_0 : i32, i32
  }
  func.func @transform_5(%arg0: i32) -> (i32, i32) {
    %c0_i32 = arith.constant 0 : i32
    %c0_i32_0 = arith.constant 0 : i32
    %c0_i32_1 = arith.constant 0 : i32
    return %c0_i32, %c0_i32_0 : i32, i32
  }
}

</mosaic_0001>

<bundles_post_ra>
// kernel: tpu_custom_call.1
= control target key start
LH: loop header
LB: loop body
LE: loop exit
PB: predicated region body
PF: predicated region fallthrough
CT: control target
= control target key end

     0   :  { %10 = vsyncpa [#allocation3], 0  ;;  %s1830_s0 = inlined_call_operand.vmem [shape: f32[80,144], index: 0, kind: input, shape index: {}]   ;;  %s1831_s1 = inlined_call_operand.vmem [shape: f32[144,128], index: 1, kind: input, shape index: {}]   ;;  %s1832_s2 = inlined_call_operand.vmem [shape: f32[1,128], index: 2, kind: input, shape index: {}]   ;;  %s1833_s3 = inlined_call_operand.hbm [shape: f32[1152,128], index: 3, kind: input, shape index: {}]   ;;  %s1834_s4 = inlined_call_operand.vmem [shape: f32[80,1], index: 4, kind: input, shape index: {}]   ;;  %s1835_s5 = inlined_call_operand.hbm [shape: f32[80,128], index: 5, kind: output, shape index: {}]  }
   0x1   :  { %11 = vsyncpa [#allocation4], 0  ;;  %s22_s20 = sshll.u32 %s1833_s3, 4  ;;  %s1274_s21 = smov [#allocation2]   ;;  %s23_s20 = int_to_ptr.hbm [resolvable:$true] %s22_s20 }
   0x2   :  { %s24_s22 = sshll.u32 %s1274_s21, 4  ;;  %s1275_s23 = smov 128   ;;  %s25_s22 = int_to_ptr.vmem [resolvable:$true] %s24_s22 }
   0x3   :  { %s1276_s24 = smov 8  }
   0x4   :  { %30 = dma.hbm_to_vmem [thread:$0]  %s23_s20, 18432, %s25_s22, [#allocation3], %s1275_s23, %s1275_s23, %s1276_s24  }
   0x5   :  { %1270 = dma.done.wait [#allocation3], 18432  }
   0x6   :  { %1271 = vsyncadd [#allocation3], 4294948864  ;;  %v1277_v0 = vmov 0   ;;  %v72_v1 = vld [vmem:[%s1831_s1 + $0x78] sm:$0xff]  ;;  %v71_v2 = vld [vmem:[%s1831_s1 + $0x70] sm:$0xff]  ;;  %vm79_vm0 = vcmask 130048  }
   0x7   :  { %1218 = vset.pattern.permute.xlu0 %v1277_v0  ;;  %1219 = vset.pattern.permute.xlu1 %v1277_v0  ;;  %v74_v3 = vld [vmem:[%s1831_s1 + $0x88] sm:$0xff]  ;;  %v73_v4 = vld [vmem:[%s1831_s1 + $0x80] sm:$0xff]  ;;  %v68_v9 = vld [vmem:[%s1831_s1 + $0x58] sm:$0xff]  ;;  %vm294_vm1 = vcmask 1043456   ;;  %vm329_vm3 = vcmask 1046528   ;;  %vm361_vm4 = vcmask 1045504  }
   0x8   :  { %1220 = vset.pattern.permute.xlu2 %v1277_v0  ;;  %110 = vmatpush.msra.mxu0 %v72_v1  ;;  %v70_v5 = vld [vmem:[%s1831_s1 + $0x68] sm:$0xff]  ;;  %v69_v7 = vld [vmem:[%s1831_s1 + $0x60] sm:$0xff]  ;;  %v67_v10 = vld [vmem:[%s1831_s1 + $0x50] sm:$0xff]  ;;  %vm393_vm5 = vcmask 1044480   ;;  %vm456_vm6 = vcmask 1042432   ;;  %vm488_vm7 = vcmask 1041408  }
   0x9   :  { %1181 = vmatpush.msra.mxu3 %v72_v1  ;;  %171 = vmatpush.msra.mxu1 %v74_v3  ;;  %v38_v6 = vld [vmem:[%s1830_s0 + $0x8] sm:$0xff]  ;;  %v214_v8 = vld [vmem:[%s1834_s4] sm:$0xff]  ;;  %v40_v12 = vld [vmem:[%s1830_s0 + $0x18] sm:$0xff]  ;;  %vm520_vm8 = vcmask 1040384   ;;  %s1155_s26 = sshll.u32 %s1835_s5, 4  ;;  %s1156_s26 = int_to_ptr.hbm [resolvable:$true] %s1155_s26 }
   0xa   :  { %111 = vmatpush.msra.mxu0 %v71_v2  ;;  %226 = vperm.xlu0 %1218, %v214_v8   ;;  %v66_v11 = vld [vmem:[%s1831_s1 + $0x48] sm:$0xff]  ;;  %v65_v14 = vld [vmem:[%s1831_s1 + $0x40] sm:$0xff]  ;;  %v64_v15 = vld [vmem:[%s1831_s1 + $0x38] sm:$0xff] }
   0xb   :  { %1182 = vmatpush.msra.mxu3 %v71_v2  ;;  %172 = vmatpush.msra.mxu1 %v73_v4  ;;  %v215_v13 = vld [vmem:[%s1834_s4 + $0x8] sm:$0xff]  ;;  %v63_v16 = vld [vmem:[%s1831_s1 + $0x30] sm:$0xff]  ;;  %v61_v21 = vld [vmem:[%s1831_s1 + $0x20] sm:$0xff] }
   0xc   :  { %112 = vmatpush.msra.mxu0 %v70_v5  ;;  %1168 = vmatmul.msk.f32.vlgmr.msra.gmra.mxu1 %vm79_vm0, %v38_v6  ;;  %v216_v17 = vld [vmem:[%s1834_s4 + $0x10] sm:$0xff]  ;;  %v62_v18 = vld [vmem:[%s1831_s1 + $0x28] sm:$0xff]  ;;  %v60_v22 = vld [vmem:[%s1831_s1 + $0x18] sm:$0xff] }
   0xd   :  { %1183 = vmatpush.msra.mxu3 %v70_v5  ;;  %236 = vperm.xlu1 %1219, %v216_v17   ;;  %v42_v19 = vld [vmem:[%s1830_s0 + $0x28] sm:$0xff]  ;;  %v220_v20 = vld [vmem:[%s1834_s4 + $0x30] sm:$0xff]  ;;  %v217_v24 = vld [vmem:[%s1834_s4 + $0x18] sm:$0xff] }
   0xe   :  { %113 = vmatpush.msra.mxu0 %v69_v7  ;;  %v59_v23 = vld [vmem:[%s1831_s1 + $0x10] sm:$0xff]  ;;  %v58_v25 = vld [vmem:[%s1831_s1 + $0x8] sm:$0xff]  ;;  %v44_v26 = vld [vmem:[%s1830_s0 + $0x38] sm:$0xff] }
   0xf   :  { %1184 = vmatpush.msra.mxu3 %v69_v7  ;;  %v223_v27 = vld [vmem:[%s1834_s4 + $0x48] sm:$0xff]  ;;  %v57_v28 = vld [vmem:[%s1831_s1] sm:$0xff]  ;;  %v221_v31 = vld [vmem:[%s1834_s4 + $0x38] sm:$0xff] }
  0x10   :  { %114 = vmatpush.msra.mxu0 %v68_v9  ;;  %v37_v29 = vld [vmem:[%s1830_s0] sm:$0xff]  ;;  %v46_v32 = vld [vmem:[%s1830_s0 + $0x48] sm:$0xff]  ;;  %v39_v33 = vld [vmem:[%s1830_s0 + $0x10] sm:$0xff] }
  0x11   :  { %1185 = vmatpush.msra.mxu3 %v68_v9  ;;  %v45_v30 = vld [vmem:[%s1830_s0 + $0x40] sm:$0xff]  ;;  %v47_v34 = vld [vmem:[%s1830_s0 + $0x50] sm:$0xff]  ;;  %v48_v35 = vld [vmem:[%s1830_s0 + $0x58] sm:$0xff] }
  0x12   :  { %115 = vmatpush.msra.mxu0 %v67_v10  ;;  %231 = vperm.xlu0 %1218, %v215_v13   ;;  %v41_v36 = vld [vmem:[%s1830_s0 + $0x20] sm:$0xff]  ;;  %v50_v39 = vld [vmem:[%s1830_s0 + $0x68] sm:$0xff]  ;;  %v43_v41 = vld [vmem:[%s1830_s0 + $0x30] sm:$0xff] }
  0x13   :  { %1186 = vmatpush.msra.mxu3 %v67_v10  ;;  %v49_v37 = vld [vmem:[%s1830_s0 + $0x60] sm:$0xff]  ;;  %v219_v40 = vld [vmem:[%s1834_s4 + $0x28] sm:$0xff]  ;;  %v51_v42 = vld [vmem:[%s1830_s0 + $0x70] sm:$0xff] }
  0x14   :  { %116 = vmatpush.msra.mxu0 %v66_v11  ;;  %1169 = vmatmul.msk.f32.gmra.mxu1 %vm79_vm0, %v40_v12  ;;  %v218_v38 = vld [vmem:[%s1834_s4 + $0x20] sm:$0xff]  ;;  %v52_v43 = vld [vmem:[%s1830_s0 + $0x78] sm:$0xff]  ;;  %v54_v46 = vld [vmem:[%s1830_s0 + $0x88] sm:$0xff] }
  0x15   :  { %1187 = vmatpush.msra.mxu3 %v66_v11  ;;  %241 = vperm.xlu1 %1219, %v217_v24   ;;  %v222_v44 = vld [vmem:[%s1834_s4 + $0x40] sm:$0xff]  ;;  %v55_v47 = vld [vmem:[%s1830_s0 + $0x90] sm:$0xff]  ;;  %v56_v48 = vld [vmem:[%s1830_s0 + $0x98] sm:$0xff] }
  0x16   :  { %117 = vmatpush.msra.mxu0 %v65_v14  ;;  %246 = vperm.xlu2 %1220, %v218_v38   ;;  %v53_v45 = vld [vmem:[%s1830_s0 + $0x80] sm:$0xff]  ;;  %v567_v49 = vld [vmem:[#allocation2 + $0x78] sm:$0xff]  ;;  %v566_v50 = vld [vmem:[#allocation2 + $0x70] sm:$0xff] }
  0x17   :  { %1188 = vmatpush.msra.mxu3 %v65_v14  ;;  %696 = vmatpush.msra.mxu2 %v567_v49  ;;  %v565_v51 = vld [vmem:[#allocation2 + $0x68] sm:$0xff]  ;;  %v564_v52 = vld [vmem:[#allocation2 + $0x60] sm:$0xff]  ;;  %v599_v53 = vld [vmem:[#allocation2 + $0x178] sm:$0xff] }
  0x18   :  { %118 = vmatpush.msra.mxu0 %v64_v15  ;;  %v563_v54 = vld [vmem:[#allocation2 + $0x58] sm:$0xff]  ;;  %790 = vmatpush.msrb.mxu1 %v599_v53  ;;  %v562_v55 = vld [vmem:[#allocation2 + $0x50] sm:$0xff]  ;;  %v561_v56 = vld [vmem:[#allocation2 + $0x48] sm:$0xff] }
  0x19   :  { %1189 = vmatpush.msra.mxu3 %v64_v15  ;;  %697 = vmatpush.msra.mxu2 %v566_v50  ;;  %v583_v57 = vld [vmem:[#allocation2 + $0xf8] sm:$0xff]  ;;  %v560_v59 = vld [vmem:[#allocation2 + $0x40] sm:$0xff]  ;;  %v582_v60 = vld [vmem:[#allocation2 + $0xf0] sm:$0xff] }
  0x1a   :  { %119 = vmatpush.msra.mxu0 %v63_v16  ;;  %256 = vperm.xlu0 %1218, %v220_v20   ;;  %v615_v58 = vld [vmem:[#allocation2 + $0x1f8] sm:$0xff]  ;;  %v598_v61 = vld [vmem:[#allocation2 + $0x170] sm:$0xff]  ;;  %v581_v0 = vld [vmem:[#allocation2 + $0xe8] sm:$0xff] }
  0x1b   :  { %1190 = vmatpush.msra.mxu3 %v63_v16  ;;  %698 = vmatpush.msra.mxu2 %v565_v51  ;;  %v614_v62 = vld [vmem:[#allocation2 + $0x1f0] sm:$0xff]  ;;  %v559_v63 = vld [vmem:[#allocation2 + $0x38] sm:$0xff]  ;;  %v597_v1 = vld [vmem:[#allocation2 + $0x168] sm:$0xff] }
  0x1c   :  { %120 = vmatpush.msra.mxu0 %v62_v18  ;;  %1170 = vmatmul.msk.f32.gmra.mxu1 %vm79_vm0, %v42_v19  ;;  %v613_v2 = vld [vmem:[#allocation2 + $0x1e8] sm:$0xff]  ;;  %v558_v3 = vld [vmem:[#allocation2 + $0x30] sm:$0xff]  ;;  %v580_v4 = vld [vmem:[#allocation2 + $0xe0] sm:$0xff] }
  0x1d   :  { %1191 = vmatpush.msra.mxu3 %v62_v18  ;;  %261 = vperm.xlu1 %1219, %v221_v31   ;;  %v596_v5 = vld [vmem:[#allocation2 + $0x160] sm:$0xff]  ;;  %v557_v7 = vld [vmem:[#allocation2 + $0x28] sm:$0xff]  ;;  %v579_v8 = vld [vmem:[#allocation2 + $0xd8] sm:$0xff] }
  0x1e   :  { %121 = vmatpush.msra.mxu0 %v61_v21  ;;  %251 = vperm.xlu2 %1220, %v219_v40   ;;  %v612_v6 = vld [vmem:[#allocation2 + $0x1e0] sm:$0xff]  ;;  %v595_v9 = vld [vmem:[#allocation2 + $0x158] sm:$0xff]  ;;  %v578_v12 = vld [vmem:[#allocation2 + $0xd0] sm:$0xff] }
  0x1f   :  { %1192 = vmatpush.msra.mxu3 %v61_v21  ;;  %699 = vmatpush.msra.mxu2 %v564_v52  ;;  %v611_v10 = vld [vmem:[#allocation2 + $0x1d8] sm:$0xff]  ;;  %v556_v11 = vld [vmem:[#allocation2 + $0x20] sm:$0xff]  ;;  %v594_v13 = vld [vmem:[#allocation2 + $0x150] sm:$0xff] }
  0x20   :  { %122 = vmatpush.msra.mxu0 %v60_v22  ;;  %791 = vmatpush.msrb.mxu1 %v598_v61  ;;  %v610_v14 = vld [vmem:[#allocation2 + $0x1d0] sm:$0xff]  ;;  %v555_v15 = vld [vmem:[#allocation2 + $0x18] sm:$0xff]  ;;  %v577_v16 = vld [vmem:[#allocation2 + $0xc8] sm:$0xff] }
  0x21   :  { %1193 = vmatpush.msra.mxu3 %v60_v22  ;;  %700 = vmatpush.msra.mxu2 %v563_v54  ;;  %v593_v17 = vld [vmem:[#allocation2 + $0x148] sm:$0xff]  ;;  %v554_v19 = vld [vmem:[#allocation2 + $0x10] sm:$0xff]  ;;  %v576_v20 = vld [vmem:[#allocation2 + $0xc0] sm:$0xff] }
  0x22   :  { %123 = vmatpush.msra.mxu0 %v59_v23  ;;  %271 = vperm.xlu0 %1218, %v223_v27   ;;  %v609_v18 = vld [vmem:[#allocation2 + $0x1c8] sm:$0xff]  ;;  %v592_v21 = vld [vmem:[#allocation2 + $0x140] sm:$0xff]  ;;  %v607_v27 = vld [vmem:[#allocation2 + $0x1b8] sm:$0xff] }
  0x23   :  { %1194 = vmatpush.msra.mxu3 %v59_v23  ;;  %701 = vmatpush.msra.mxu2 %v562_v55  ;;  %v608_v23 = vld [vmem:[#allocation2 + $0x1c0] sm:$0xff]  ;;  %v553_v24 = vld [vmem:[#allocation2 + $0x8] sm:$0xff]  ;;  %v606_v31 = vld [vmem:[#allocation2 + $0x1b0] sm:$0xff] }
  0x24   :  { %124 = vmatpush.msra.mxu0 %v58_v25  ;;  %1171 = vmatmul.msk.f32.gmra.mxu1 %vm79_vm0, %v44_v26  ;;  %v591_v26 = vld [vmem:[#allocation2 + $0x138] sm:$0xff]  ;;  %v568_v49 = vld [vmem:[#allocation2 + $0x80] sm:$0xff]  ;;  %v630_v53 = vld [vmem:[#allocation2 + $0x270] sm:$0xff] }
  0x25   :  { %1195 = vmatpush.msra.mxu3 %v58_v25  ;;  %702 = vmatpush.msra.mxu2 %v561_v56  ;;  %v575_v25 = vld [vmem:[#allocation2 + $0xb8] sm:$0xff]  ;;  %v584_v50 = vld [vmem:[#allocation2 + $0x100] sm:$0xff]  ;;  %v629_v54 = vld [vmem:[#allocation2 + $0x268] sm:$0xff] }
  0x26   :  { %125 = vmatpush.msra.mxu0 %v57_v28  ;;  %266 = vperm.xlu2 %1220, %v222_v44   ;;  %v587_v40 = vld [vmem:[#allocation2 + $0x118] sm:$0xff]  ;;  %v602_v44 = vld [vmem:[#allocation2 + $0x190] sm:$0xff]  ;;  %v600_v51 = vld [vmem:[#allocation2 + $0x180] sm:$0xff] }
  0x27   :  { %1196 = vmatpush.msra.mxu3 %v57_v28  ;;  %126 = vmatmul.f32.vlgmr.msra.gmra.mxu0 %v37_v29  ;;  %v552_v28 = vld [vmem:[#allocation2] sm:$0xff]  ;;  %v574_v29 = vld [vmem:[#allocation2 + $0xb0] sm:$0xff]  ;;  %vm1178_vm2 = vmneg %vm294_vm1 }
  0x28   :  { %138 = vmatmul.f32.vlgmr.msra.gmra.mxu3 %v45_v30  ;;  %837 = vmatpush.msrb.mxu0 %v615_v58  ;;  %v590_v30 = vld [vmem:[#allocation2 + $0x130] sm:$0xff]  ;;  %v1474_v55 = vld [vmem:[%s1832_s2] ss:$0 sm:$0xff]  ;;  %s1278_s2 = smov [#allocation5]  }
  0x29   :  { %743 = vmatpush.msrb.mxu3 %v583_v57  ;;  %703 = vmatpush.msra.mxu2 %v560_v59  ;;  %v628_v61 = vld [vmem:[#allocation2 + $0x260] sm:$0xff]  ;;  %s1153_s21 = sshll.u32 %s1278_s2, 4  ;;  %s1154_s21 = int_to_ptr.vmem [resolvable:$true] %s1153_s21 }
  0x2a   :  { %838 = vmatpush.msrb.mxu0 %v614_v62  ;;  %792 = vmatpush.msrb.mxu1 %v597_v1 }
  0x2b   :  { %744 = vmatpush.msrb.mxu3 %v582_v60  ;;  %704 = vmatpush.msra.mxu2 %v559_v63 }
  0x2c   :  { %1172 = vmatmul.msk.f32.gmra.mxu1 %vm79_vm0, %v46_v32  ;;  %839 = vmatpush.msrb.mxu0 %v613_v2  ;;  %v573_v32 = vld [vmem:[#allocation2 + $0xa8] sm:$0xff] }
  0x2d   :  { %745 = vmatpush.msrb.mxu3 %v581_v0  ;;  %793 = vmatpush.msrb.mxu1 %v596_v5  ;;  %v627_v5 = vld [vmem:[#allocation2 + $0x258] sm:$0xff] }
  0x2e   :  { %705 = vmatpush.msra.mxu2 %v558_v3  ;;  %840 = vmatpush.msrb.mxu0 %v612_v6  ;;  %v626_v6 = vld [vmem:[#allocation2 + $0x250] sm:$0xff] }
  0x2f   :  { %129 = vmatmul.f32.gmra.mxu0 %v39_v33  ;;  %746 = vmatpush.msrb.mxu3 %v580_v4  ;;  %v589_v33 = vld [vmem:[#allocation2 + $0x128] sm:$0xff] }
  0x30   :  { %141 = vmatmul.f32.gmra.mxu3 %v47_v34  ;;  %706 = vmatpush.msra.mxu2 %v557_v7  ;;  %v605_v34 = vld [vmem:[#allocation2 + $0x1a8] sm:$0xff] }
  0x31   :  { %747 = vmatpush.msrb.mxu3 %v579_v8  ;;  %794 = vmatpush.msrb.mxu1 %v595_v9 }
  0x32   :  { %841 = vmatpush.msrb.mxu0 %v611_v10  ;;  %707 = vmatpush.msra.mxu2 %v556_v11 }
  0x33   :  { %748 = vmatpush.msrb.mxu3 %v578_v12  ;;  %795 = vmatpush.msrb.mxu1 %v594_v13 }
  0x34   :  { %1173 = vmatmul.msk.f32.gmra.mxu1 %vm79_vm0, %v48_v35  ;;  %842 = vmatpush.msrb.mxu0 %v610_v14  ;;  %v572_v35 = vld [vmem:[#allocation2 + $0xa0] sm:$0xff] }
  0x35   :  { %708 = vmatpush.msra.mxu2 %v555_v15  ;;  %749 = vmatpush.msrb.mxu3 %v577_v16 }
  0x36   :  { %796 = vmatpush.msrb.mxu1 %v593_v17  ;;  %843 = vmatpush.msrb.mxu0 %v609_v18  ;;  %v625_v17 = vld [vmem:[#allocation2 + $0x248] sm:$0xff]  ;;  %v624_v18 = vld [vmem:[#allocation2 + $0x240] sm:$0xff] }
  0x37   :  { %132 = vmatmul.f32.gmra.mxu0 %v41_v36  ;;  %709 = vmatpush.msra.mxu2 %v554_v19  ;;  %v588_v36 = vld [vmem:[#allocation2 + $0x120] sm:$0xff] }
  0x38   :  { %144 = vmatmul.f32.gmra.mxu3 %v49_v37  ;;  %797 = vmatpush.msrb.mxu1 %v592_v21  ;;  %v604_v37 = vld [vmem:[#allocation2 + $0x1a0] sm:$0xff] }
  0x39   :  { %750 = vmatpush.msrb.mxu3 %v576_v20  ;;  %844 = vmatpush.msrb.mxu0 %v608_v23 }
  0x3a   :  { %710 = vmatpush.msra.mxu2 %v553_v24  ;;  %798 = vmatpush.msrb.mxu1 %v591_v26 }
  0x3b   :  { %751 = vmatpush.msrb.mxu3 %v575_v25  ;;  %845 = vmatpush.msrb.mxu0 %v607_v27 }
  0x3c   :  { %1174 = vmatmul.msk.f32.gmra.mxu1 %vm79_vm0, %v50_v39  ;;  %711 = vmatpush.msra.mxu2 %v552_v28  ;;  %v571_v39 = vld [vmem:[#allocation2 + $0x98] sm:$0xff] }
  0x3d   :  { %752 = vmatpush.msrb.mxu3 %v574_v29  ;;  %799 = vmatpush.msrb.mxu1 %v590_v30 }
  0x3e   :  { %846 = vmatpush.msrb.mxu0 %v606_v31 }
  0x3f   :  { %135 = vmatmul.f32.gmra.mxu0 %v43_v41  ;;  %753 = vmatpush.msrb.mxu3 %v573_v32  ;;  %v603_v41 = vld [vmem:[#allocation2 + $0x198] sm:$0xff] }
  0x40   :  { %147 = vmatmul.f32.gmra.mxu3 %v51_v42  ;;  %800 = vmatpush.msrb.mxu1 %v589_v33  ;;  %v570_v42 = vld [vmem:[#allocation2 + $0x90] sm:$0xff] }
  0x41   :  { %847 = vmatpush.msrb.mxu0 %v605_v34  ;;  %754 = vmatpush.msrb.mxu3 %v572_v35 }
  0x42   :  { %801 = vmatpush.msrb.mxu1 %v588_v36 }
  0x43   :  { %848 = vmatpush.msrb.mxu0 %v604_v37  ;;  %755 = vmatpush.msrb.mxu3 %v571_v39 }
  0x44   :  { %1175 = vmatmul.msk.f32.gmra.mxu1 %vm79_vm0, %v52_v43  ;;  %v586_v43 = vld [vmem:[#allocation2 + $0x110] sm:$0xff] }
  0x45   :  { %802 = vmatpush.msrb.mxu1 %v587_v40  ;;  %849 = vmatpush.msrb.mxu0 %v603_v41  ;;  %v679_v40 = vld [vmem:[#allocation2 + $0x3f8] sm:$0xff] }
  0x46   :  { %756 = vmatpush.msrb.mxu3 %v570_v42  ;;  %v623_v41 = vld [vmem:[#allocation2 + $0x238] sm:$0xff]  ;;  %v678_v42 = vld [vmem:[#allocation2 + $0x3f0] sm:$0xff] }
  0x47   :  { %803 = vmatpush.msrb.mxu1 %v586_v43  ;;  %850 = vmatpush.msrb.mxu0 %v602_v44  ;;  %v622_v43 = vld [vmem:[#allocation2 + $0x230] sm:$0xff] }
  0x48   :  { %150 = vmatmul.f32.gmra.mxu3 %v53_v45  ;;  %v631_v45 = vld [vmem:[#allocation2 + $0x278] sm:$0xff] }
  0x49   :  { %884 = vmatpush.msrb.mxu2 %v631_v45 }
  0x4b   :  { %885 = vmatpush.msrb.mxu2 %v630_v53 }
  0x4c   :  { %1176 = vmatmul.msk.f32.gmra.mxu1 %vm79_vm0, %v54_v46  ;;  %v569_v46 = vld [vmem:[#allocation2 + $0x88] sm:$0xff] }
  0x4d   :  { %757 = vmatpush.msrb.mxu3 %v569_v46  ;;  %886 = vmatpush.msrb.mxu2 %v629_v54 }
  0x4f   :  { %758 = vmatpush.msrb.mxu3 %v568_v49  ;;  %887 = vmatpush.msrb.mxu2 %v628_v61 }
  0x50   :  { %153 = vmatmul.f32.gmra.mxu3 %v55_v47  ;;  %v585_v47 = vld [vmem:[#allocation2 + $0x108] sm:$0xff] }
  0x51   :  { %804 = vmatpush.msrb.mxu1 %v585_v47  ;;  %888 = vmatpush.msrb.mxu2 %v627_v5 }
  0x53   :  { %805 = vmatpush.msrb.mxu1 %v584_v50  ;;  %889 = vmatpush.msrb.mxu2 %v626_v6  ;;  %v677_v50 = vld [vmem:[#allocation2 + $0x3e8] sm:$0xff] }
  0x54   :  { %1177 = vmatmul.msk.f32.gmra.mxu1 %vm79_vm0, %v56_v48  ;;  %v601_v48 = vld [vmem:[#allocation2 + $0x188] sm:$0xff] }
  0x55   :  { %851 = vmatpush.msrb.mxu0 %v601_v48  ;;  %890 = vmatpush.msrb.mxu2 %v625_v17 }
  0x57   :  { %852 = vmatpush.msrb.mxu0 %v600_v51  ;;  %891 = vmatpush.msrb.mxu2 %v624_v18  ;;  %v647_v51 = vld [vmem:[#allocation2 + $0x2f8] sm:$0xff] }
  0x58   :  { %931 = vmatpush.msra.mxu3 %v647_v51 }
  0x59   :  { %1025 = vmatpush.msra.mxu0 %v679_v40  ;;  %892 = vmatpush.msrb.mxu2 %v623_v41  ;;  %v644_v40 = vld [vmem:[#allocation2 + $0x2e0] sm:$0xff] }
  0x5b   :  { %1026 = vmatpush.msra.mxu0 %v678_v42  ;;  %893 = vmatpush.msrb.mxu2 %v622_v43  ;;  %v660_v42 = vld [vmem:[#allocation2 + $0x360] sm:$0xff] }
  0x5d   :  { %1027 = vmatpush.msra.mxu0 %v677_v50 }
  0x70   :  { %v247_v45 = vpop.permute.xlu2 %246 }
  0x7c   :  { %v227_v59 = vpop.permute.xlu0 %226 }
  0x7f   :  { %v237_v19 = vpop.permute.xlu1 %236 }
  0x84   :  { %v232_v8 = vpop.permute.xlu0 %231 }
  0x87   :  { %v242_v53 = vpop.permute.xlu1 %241 }
  0x89   :  { %v1469_v22 = vpop.f32.mrf.mxu1 }
  0x91   :  { %v177_v38 = vpop.f32.mrf.mxu1 }
  0x99   :  { %v180_v52 = vpop.f32.mrf.mxu1 }
  0xa1   :  { %v1476_v56 = vpop.f32.mrf.mxu1 }
  0xa4   :  { %v127_v57 = vpop.f32.mrf.mxu0 }
  0xa5   :  { %v128_v58 = vadd.f32 %v1474_v55, %v127_v57 }
  0xa7   :  { %v175_v60 = vadd.f32 %v1469_v22, %v128_v58  ;;  %v621_v58 = vld [vmem:[#allocation2 + $0x228] sm:$0xff] }
  0xa8   :  { %894 = vmatpush.msrb.mxu2 %v621_v58 }
  0xa9   :  { %v204_v62 = vmax.f32 %v175_v60, 0.0  ;;  %v186_v0 = vpop.f32.mrf.mxu1 }
  0xab   :  { %v139_v63 = vpop.f32.mrf.mxu3  ;;  %v274_v1 = vmul.f32 %v227_v59, %v204_v62 }
  0xac   :  { %v130_v2 = vpop.f32.mrf.mxu0  ;;  %v140_v28 = vadd.f32 %v1474_v55, %v139_v63 }
  0xad   :  { %v131_v3 = vadd.f32 %v1474_v55, %v130_v2  ;;  %v295_v4 = vrot.slane %v274_v1, 4  ;;  %v620_v1 = vld [vmem:[#allocation2 + $0x220] sm:$0xff]  ;;  %v646_v2 = vld [vmem:[#allocation2 + $0x2f0] sm:$0xff] }
  0xae   :  { %v187_v37 = vadd.f32 %v186_v0, %v140_v28  ;;  %v676_v0 = vld [vmem:[#allocation2 + $0x3e0] sm:$0xff]  ;;  %932 = vmatpush.msra.mxu3 %v646_v2  ;;  %895 = vmatpush.msrb.mxu2 %v620_v1  ;;  %v662_v28 = vld [vmem:[#allocation2 + $0x370] sm:$0xff] }
  0xaf   :  { %v178_v7 = vadd.f32 %v177_v38, %v131_v3  ;;  %1179 = vmatmul.msk.f32.vlgmr.msra.gmra.mxu2 %vm1178_vm2, %v295_v4  ;;  %v1485_v13 = vsel %vm294_vm1, 0.0, %v295_v4  ;;  %1028 = vmatpush.msra.mxu0 %v676_v0 }
  0xb0   :  { %v330_v22 = vrot.slane %v1485_v13, 1  ;;  %v362_v23 = vrot.slane %v1485_v13, 2  ;;  %v394_v26 = vrot.slane %v1485_v13, 3 }
  0xb1   :  { %v205_v9 = vmax.f32 %v178_v7, 0.0  ;;  %v1482_v11 = vpop.f32.mrf.mxu1 }
  0xb3   :  { %v142_v10 = vpop.f32.mrf.mxu3  ;;  %v275_v12 = vmul.f32 %v232_v8, %v205_v9 }
  0xb4   :  { %v133_v14 = vpop.f32.mrf.mxu0  ;;  %v143_v54 = vadd.f32 %v1474_v55, %v142_v10 }
  0xb5   :  { %v296_v15 = vrot.slane %v275_v12, 4  ;;  %v134_v16 = vadd.f32 %v1474_v55, %v133_v14  ;;  %v675_v12 = vld [vmem:[#allocation2 + $0x3d8] sm:$0xff] }
  0xb6   :  { %v190_v3 = vadd.f32 %v1482_v11, %v143_v54  ;;  %v663_v11 = vld [vmem:[#allocation2 + $0x378] sm:$0xff]  ;;  %1029 = vmatpush.msra.mxu0 %v675_v12  ;;  %v640_v12 = vld [vmem:[#allocation2 + $0x2c0] sm:$0xff] }
  0xb7   :  { %v1489_v20 = vsel %vm294_vm1, %v295_v4, %v296_v15  ;;  %v181_v21 = vadd.f32 %v180_v52, %v134_v16  ;;  %v208_v52 = vmax.f32 %v187_v37, 0.0  ;;  %v252_v16 = vpop.permute.xlu2 %251  ;;  %978 = vmatpush.msra.mxu1 %v663_v11  ;;  %v659_v54 = vld [vmem:[#allocation2 + $0x358] sm:$0xff] }
  0xb8   :  { %715 = vmatmul.f32.gmra.mxu2 %v1489_v20  ;;  %v331_v24 = vrot.slane %v1489_v20, 1  ;;  %v363_v25 = vrot.slane %v1489_v20, 2  ;;  %v395_v27 = vrot.slane %v1489_v20, 3  ;;  %v209_v14 = vmax.f32 %v190_v3, 0.0 }
  0xb9   :  { %v206_v29 = vmax.f32 %v181_v21, 0.0  ;;  %v1502_v34 = vpop.f32.mrf.mxu1  ;;  %v1520_v4 = vmul.f32 %v247_v45, %v208_v52  ;;  %979 = vmatpush.msra.mxu1 %v662_v28  ;;  %v638_v28 = vld [vmem:[#allocation2 + $0x2b0] sm:$0xff] }
  0xba   :  { %v332_v31 = vsel %vm329_vm3, %v330_v22, %v331_v24  ;;  %v364_v32 = vsel %vm361_vm4, %v362_v23, %v363_v25  ;;  %v396_v33 = vsel %vm393_vm5, %v394_v26, %v395_v27  ;;  %v619_v26 = vld [vmem:[#allocation2 + $0x218] sm:$0xff] }
  0xbb   :  { %v145_v30 = vpop.f32.mrf.mxu3  ;;  %v276_v35 = vmul.f32 %v237_v19, %v206_v29  ;;  %759 = vmatmul.f32.vlgmr.msrb.gmra.mxu3 %v332_v31  ;;  %806 = vmatmul.f32.vlgmr.msrb.gmra.mxu1 %v364_v32  ;;  %v1539_v29 = vmul.f32 %v252_v16, %v209_v14  ;;  %v257_v31 = vpop.permute.xlu0 %256 }
  0xbc   :  { %853 = vmatmul.f32.vlgmr.msrb.gmra.mxu0 %v396_v33  ;;  %v136_v36 = vpop.f32.mrf.mxu0  ;;  %v146_v6 = vadd.f32 %v1474_v55, %v145_v30  ;;  %896 = vmatpush.msrb.mxu2 %v619_v26  ;;  %v674_v30 = vld [vmem:[#allocation2 + $0x3d0] sm:$0xff]  ;;  %v655_v26 = vld [vmem:[#allocation2 + $0x338] sm:$0xff] }
  0xbd   :  { %v298_v38 = vrot.slane %v276_v35, 4  ;;  %v137_v39 = vadd.f32 %v1474_v55, %v136_v36  ;;  %1030 = vmatpush.msra.mxu0 %v674_v30  ;;  %v304_v41 = vrot.slane %v1539_v29, 4 }
  0xbf   :  { %v1506_v44 = vsel %vm294_vm1, %v296_v15, %v298_v38  ;;  %v184_v46 = vadd.f32 %v1476_v56, %v137_v39  ;;  %v302_v15 = vrot.slane %v1520_v4, 4  ;;  %v618_v39 = vld [vmem:[#allocation2 + $0x210] sm:$0xff] }
  0xc0   :  { %718 = vmatmul.f32.gmra.mxu2 %v1506_v44  ;;  %v333_v47 = vrot.slane %v1506_v44, 1  ;;  %v365_v48 = vrot.slane %v1506_v44, 2  ;;  %v397_v49 = vrot.slane %v1506_v44, 3 }
  0xc1   :  { %v207_v57 = vmax.f32 %v184_v46, 0.0  ;;  %v1517_v62 = vpop.f32.mrf.mxu1  ;;  %897 = vmatpush.msrb.mxu2 %v618_v39  ;;  %v1561_v58 = vsel %vm294_vm1, %v302_v15, %v304_v41  ;;  %v1602_v39 = vld [vmem:[#allocation2 + $0x478] sm:$0xff] }
  0xc2   :  { %v334_v59 = vsel %vm329_vm3, %v331_v24, %v333_v47  ;;  %v366_v60 = vsel %vm361_vm4, %v363_v25, %v365_v48  ;;  %v398_v61 = vsel %vm393_vm5, %v395_v27, %v397_v49  ;;  %v193_v24 = vadd.f32 %v1502_v34, %v146_v6  ;;  %v645_v27 = vld [vmem:[#allocation2 + $0x2e8] sm:$0xff] }
  0xc3   :  { %v148_v56 = vpop.f32.mrf.mxu3  ;;  %v277_v63 = vmul.f32 %v242_v53, %v207_v57  ;;  %762 = vmatmul.f32.gmra.mxu3 %v334_v59  ;;  %809 = vmatmul.f32.gmra.mxu1 %v366_v60  ;;  %v643_v53 = vld [vmem:[#allocation2 + $0x2d8] sm:$0xff]  ;;  %v673_v57 = vld [vmem:[#allocation2 + $0x3c8] sm:$0xff]  ;;  %v658_v60 = vld [vmem:[#allocation2 + $0x350] sm:$0xff]  ;;  %v272_v1 = vpop.permute.xlu0 %271  ;;  %v339_v3 = vrot.slane %v1561_v58, 1  ;;  %v371_v4 = vrot.slane %v1561_v58, 2  ;;  %v403_v11 = vrot.slane %v1561_v58, 3 }
  0xc4   :  { %856 = vmatmul.f32.gmra.mxu0 %v398_v61  ;;  %933 = vmatpush.msra.mxu3 %v645_v27  ;;  %v149_v32 = vadd.f32 %v1474_v55, %v148_v56  ;;  %v210_v35 = vmax.f32 %v193_v24, 0.0  ;;  %v617_v59 = vld [vmem:[#allocation2 + $0x208] sm:$0xff]  ;;  %v616_v24 = vld [vmem:[#allocation2 + $0x200] sm:$0xff]  ;;  %v671_v27 = vld [vmem:[#allocation2 + $0x3b8] sm:$0xff] }
  0xc5   :  { %v300_v5 = vrot.slane %v277_v63, 4  ;;  %1031 = vmatpush.msra.mxu0 %v673_v57  ;;  %898 = vmatpush.msrb.mxu2 %v617_v59  ;;  %v267_v63 = vpop.permute.xlu2 %266  ;;  %v657_v6 = vld [vmem:[#allocation2 + $0x348] sm:$0xff]  ;;  %v694_v59 = vld [vmem:[#allocation2 + $0x470] sm:$0xff] }
  0xc6   :  { %v196_v43 = vadd.f32 %v1517_v62, %v149_v32  ;;  %934 = vmatpush.msra.mxu3 %v644_v40 }
  0xc7   :  { %v1524_v7 = vsel %vm294_vm1, %v298_v38, %v300_v5  ;;  %v1535_v23 = vsel %vm294_vm1, %v300_v5, %v302_v15  ;;  %v661_v38 = vld [vmem:[#allocation2 + $0x368] sm:$0xff]  ;;  %899 = vmatpush.msrb.mxu2 %v616_v24  ;;  %v692_v24 = vld [vmem:[#allocation2 + $0x460] sm:$0xff] }
  0xc8   :  { %721 = vmatmul.f32.gmra.mxu2 %v1524_v7  ;;  %v335_v8 = vrot.slane %v1524_v7, 1  ;;  %v367_v9 = vrot.slane %v1524_v7, 2  ;;  %v399_v10 = vrot.slane %v1524_v7, 3  ;;  %v337_v33 = vrot.slane %v1535_v23, 1  ;;  %980 = vmatpush.msra.mxu1 %v661_v38  ;;  %v641_v5 = vld [vmem:[#allocation2 + $0x2c8] sm:$0xff] }
  0xc9   :  { %v198_v22 = vpop.f32.mrf.mxu1  ;;  %v369_v34 = vrot.slane %v1535_v23, 2  ;;  %v401_v36 = vrot.slane %v1535_v23, 3  ;;  %935 = vmatpush.msra.mxu3 %v643_v53  ;;  %v211_v61 = vmax.f32 %v196_v43, 0.0  ;;  %v653_v38 = vld [vmem:[#allocation2 + $0x328] sm:$0xff]  ;;  %1197 = vmatpush.msra.mxu2 %v1602_v39  ;;  %v668_v53 = vld [vmem:[#allocation2 + $0x3a0] sm:$0xff] }
  0xca   :  { %v336_v18 = vsel %vm329_vm3, %v333_v47, %v335_v8  ;;  %v368_v19 = vsel %vm361_vm4, %v365_v48, %v367_v9  ;;  %v400_v21 = vsel %vm393_vm5, %v397_v49, %v399_v10  ;;  %v338_v46 = vsel %vm329_vm3, %v335_v8, %v337_v33  ;;  %981 = vmatpush.msra.mxu1 %v660_v42  ;;  %v672_v8 = vld [vmem:[#allocation2 + $0x3c0] sm:$0xff] }
  0xcb   :  { %v151_v17 = vpop.f32.mrf.mxu3  ;;  %765 = vmatmul.f32.gmra.mxu3 %v336_v18  ;;  %812 = vmatmul.f32.gmra.mxu1 %v368_v19  ;;  %v370_v47 = vsel %vm361_vm4, %v367_v9, %v369_v34  ;;  %v1554_v49 = vmul.f32 %v257_v31, %v210_v35  ;;  %v402_v51 = vsel %vm393_vm5, %v399_v10, %v401_v36  ;;  %v262_v9 = vpop.permute.xlu1 %261 }
  0xcc   :  { %v152_v25 = vadd.f32 %v1474_v55, %v151_v17  ;;  %859 = vmatmul.f32.gmra.mxu0 %v400_v21  ;;  %982 = vmatpush.msra.mxu1 %v659_v54  ;;  %v1570_v14 = vmul.f32 %v262_v9, %v211_v61  ;;  %v340_v15 = vsel %vm329_vm3, %v337_v33, %v339_v3  ;;  %v656_v17 = vld [vmem:[#allocation2 + $0x340] sm:$0xff]  ;;  %v654_v33 = vld [vmem:[#allocation2 + $0x330] sm:$0xff]  ;;  %v635_v54 = vld [vmem:[#allocation2 + $0x298] sm:$0xff] }
  0xcd   :  { %v306_v62 = vrot.slane %v1554_v49, 4  ;;  %1032 = vmatpush.msra.mxu0 %v672_v8  ;;  %v372_v16 = vsel %vm361_vm4, %v369_v34, %v371_v4  ;;  %v404_v21 = vsel %vm393_vm5, %v401_v36, %v403_v11  ;;  %v670_v34 = vld [vmem:[#allocation2 + $0x3b0] sm:$0xff]  ;;  %v652_v49 = vld [vmem:[#allocation2 + $0x320] sm:$0xff]  ;;  %1198 = vmatpush.msra.mxu2 %v694_v59 }
  0xce   :  { %v199_v37 = vadd.f32 %v198_v22, %v152_v25  ;;  %983 = vmatpush.msra.mxu1 %v658_v60  ;;  %v639_v25 = vld [vmem:[#allocation2 + $0x2b8] sm:$0xff]  ;;  %v308_v29 = vrot.slane %v1570_v14, 4  ;;  %v666_v9 = vld [vmem:[#allocation2 + $0x390] sm:$0xff] }
  0xcf   :  { %v1579_v18 = vsel %vm294_vm1, %v304_v41, %v306_v62  ;;  %1033 = vmatpush.msra.mxu0 %v671_v27 }
  0xd0   :  { %724 = vmatmul.f32.gmra.mxu2 %v1535_v23  ;;  %v212_v52 = vmax.f32 %v199_v37, 0.0  ;;  %984 = vmatpush.msra.mxu1 %v657_v6  ;;  %v341_v31 = vrot.slane %v1579_v18, 1  ;;  %v373_v32 = vrot.slane %v1579_v18, 2  ;;  %v405_v35 = vrot.slane %v1579_v18, 3  ;;  %v637_v37 = vld [vmem:[#allocation2 + $0x2a8] sm:$0xff] }
  0xd1   :  { %v201_v48 = vpop.f32.mrf.mxu1  ;;  %1034 = vmatpush.msra.mxu0 %v670_v34  ;;  %v1608_v41 = vsel %vm294_vm1, %v306_v62, %v308_v29  ;;  %v690_v34 = vld [vmem:[#allocation2 + $0x450] sm:$0xff] }
  0xd2   :  { %v1564_v2 = vmul.f32 %v267_v63, %v212_v52  ;;  %985 = vmatpush.msra.mxu1 %v656_v17  ;;  %v342_v42 = vsel %vm329_vm3, %v339_v3, %v341_v31  ;;  %v374_v43 = vsel %vm361_vm4, %v371_v4, %v373_v32  ;;  %v343_v61 = vrot.slane %v1608_v41, 1  ;;  %v667_v63 = vld [vmem:[#allocation2 + $0x398] sm:$0xff]  ;;  %v650_v4 = vld [vmem:[#allocation2 + $0x310] sm:$0xff]  ;;  %v665_v17 = vld [vmem:[#allocation2 + $0x388] sm:$0xff] }
  0xd3   :  { %v154_v45 = vpop.f32.mrf.mxu3  ;;  %768 = vmatmul.f32.gmra.mxu3 %v338_v46  ;;  %815 = vmatmul.f32.gmra.mxu1 %v370_v47  ;;  %v636_v46 = vld [vmem:[#allocation2 + $0x2a0] sm:$0xff]  ;;  %v375_v62 = vrot.slane %v1608_v41, 2  ;;  %v407_v3 = vrot.slane %v1608_v41, 3 }
  0xd4   :  { %v155_v50 = vadd.f32 %v1474_v55, %v154_v45  ;;  %862 = vmatmul.f32.gmra.mxu0 %v402_v51  ;;  %v642_v55 = vld [vmem:[#allocation2 + $0x2d0] sm:$0xff]  ;;  %v310_v22 = vrot.slane %v1564_v2, 4  ;;  %986 = vmatpush.msra.mxu1 %v655_v26  ;;  %v669_v45 = vld [vmem:[#allocation2 + $0x3a8] sm:$0xff]  ;;  %v344_v6 = vsel %vm329_vm3, %v341_v31, %v343_v61 }
  0xd5   :  { %936 = vmatpush.msra.mxu3 %v642_v55  ;;  %1035 = vmatpush.msra.mxu0 %v669_v45  ;;  %v376_v8 = vsel %vm361_vm4, %v373_v32, %v375_v62 }
  0xd6   :  { %v202_v56 = vadd.f32 %v201_v48, %v155_v50  ;;  %987 = vmatpush.msra.mxu1 %v654_v33  ;;  %v406_v48 = vsel %vm393_vm5, %v403_v11, %v405_v35  ;;  %v1655_v11 = vsel %vm294_vm1, %v308_v29, %v310_v22  ;;  %v691_v29 = vld [vmem:[#allocation2 + $0x458] sm:$0xff] }
  0xd7   :  { %937 = vmatpush.msra.mxu3 %v641_v5  ;;  %1036 = vmatpush.msra.mxu0 %v668_v53  ;;  %v633_v5 = vld [vmem:[#allocation2 + $0x288] sm:$0xff]  ;;  %v345_v2 = vrot.slane %v1655_v11, 1  ;;  %v377_v14 = vrot.slane %v1655_v11, 2 }
  0xd8   :  { %v213_v0 = vmax.f32 %v202_v56, 0.0  ;;  %727 = vmatmul.f32.gmra.mxu2 %v1561_v58  ;;  %988 = vmatpush.msra.mxu1 %v653_v38  ;;  %v651_v56 = vld [vmem:[#allocation2 + $0x318] sm:$0xff] }
  0xd9   :  { %938 = vmatpush.msra.mxu3 %v640_v12  ;;  %1037 = vmatpush.msra.mxu0 %v667_v63  ;;  %v408_v12 = vsel %vm393_vm5, %v405_v35, %v407_v3  ;;  %v346_v26 = vsel %vm329_vm3, %v343_v61, %v345_v2  ;;  %v378_v27 = vsel %vm361_vm4, %v375_v62, %v377_v14  ;;  %v522_v62 = vrot.slane %v1489_v20, 7 }
  0xda   :  { %v283_v10 = vmul.f32 %v272_v1, %v213_v0  ;;  %989 = vmatpush.msra.mxu1 %v652_v49  ;;  %v634_v0 = vld [vmem:[#allocation2 + $0x290] sm:$0xff]  ;;  %v457_v63 = vrot.slane %v1485_v13, 5 }
  0xdb   :  { %771 = vmatmul.f32.gmra.mxu3 %v340_v15  ;;  %818 = vmatmul.f32.gmra.mxu1 %v372_v16  ;;  %v632_v15 = vld [vmem:[#allocation2 + $0x280] sm:$0xff]  ;;  %v693_v16 = vld [vmem:[#allocation2 + $0x468] sm:$0xff] }
  0xdc   :  { %v1581_v19 = vrot.slane %v283_v10, 4  ;;  %865 = vmatmul.f32.gmra.mxu0 %v404_v21  ;;  %939 = vmatpush.msra.mxu3 %v639_v25  ;;  %v649_v10 = vld [vmem:[#allocation2 + $0x308] sm:$0xff]  ;;  %v648_v21 = vld [vmem:[#allocation2 + $0x300] sm:$0xff]  ;;  %v409_v25 = vrot.slane %v1655_v11, 3 }
  0xdd   :  { %990 = vmatpush.msra.mxu1 %v651_v56  ;;  %1038 = vmatpush.msra.mxu0 %v666_v9  ;;  %v458_v56 = vrot.slane %v1489_v20, 5  ;;  %v430_v9 = vrot.slane %v1524_v7, 4 }
  0xde   :  { %v1592_v30 = vsel %vm294_vm1, %v310_v22, %v1581_v19  ;;  %v1599_v36 = vsel %vm294_vm1, %v1581_v19, 0.0  ;;  %940 = vmatpush.msra.mxu3 %v638_v28  ;;  %v664_v22 = vld [vmem:[#allocation2 + $0x380] sm:$0xff]  ;;  %1199 = vmatpush.msra.mxu2 %v693_v16  ;;  %v410_v28 = vsel %vm393_vm5, %v407_v3, %v409_v25  ;;  %v687_v3 = vld [vmem:[#allocation2 + $0x438] sm:$0xff] }
  0xdf   :  { %v474_v40 = vrot.slane %v1592_v30, 5  ;;  %v506_v47 = vrot.slane %v1592_v30, 6  ;;  %v538_v50 = vrot.slane %v1592_v30, 7  ;;  %v476_v51 = vrot.slane %v1599_v36, 5  ;;  %991 = vmatpush.msra.mxu1 %v650_v4  ;;  %1039 = vmatpush.msra.mxu0 %v665_v17 }
  0xe0   :  { %730 = vmatmul.f32.gmra.mxu2 %v1579_v18  ;;  %941 = vmatpush.msra.mxu3 %v637_v37  ;;  %v508_v52 = vrot.slane %v1599_v36, 6  ;;  %v540_v57 = vrot.slane %v1599_v36, 7  ;;  %v347_v31 = vrot.slane %v1592_v30, 1  ;;  %v379_v32 = vrot.slane %v1592_v30, 2 }
  0xe1   :  { %v1628_v55 = vsel %vm456_vm6, %v474_v40, %v476_v51  ;;  %992 = vmatpush.msra.mxu1 %v649_v10  ;;  %1040 = vmatpush.msra.mxu0 %v664_v22  ;;  %v411_v33 = vrot.slane %v1592_v30, 3  ;;  %v349_v45 = vrot.slane %v1599_v36, 1  ;;  %v413_v49 = vrot.slane %v1599_v36, 3  ;;  %v686_v10 = vld [vmem:[#allocation2 + $0x430] sm:$0xff] }
  0xe2   :  { %942 = vmatpush.msra.mxu3 %v636_v46  ;;  %v1633_v60 = vsel %vm488_vm7, %v506_v47, %v508_v52  ;;  %v1640_v1 = vsel %vm520_vm8, %v538_v50, %v540_v57  ;;  %1200 = vmatpush.msra.mxu2 %v692_v24  ;;  %v348_v35 = vsel %vm329_vm3, %v345_v2, %v347_v31  ;;  %v381_v46 = vrot.slane %v1599_v36, 2  ;;  %v688_v57 = vld [vmem:[#allocation2 + $0x440] sm:$0xff]  ;;  %v685_v2 = vld [vmem:[#allocation2 + $0x428] sm:$0xff] }
  0xe3   :  { %774 = vmatmul.f32.gmra.mxu3 %v342_v42  ;;  %821 = vmatmul.f32.gmra.mxu1 %v374_v43  ;;  %v380_v37 = vsel %vm361_vm4, %v377_v14, %v379_v32  ;;  %v412_v38 = vsel %vm393_vm5, %v409_v25, %v411_v33  ;;  %v689_v42 = vld [vmem:[#allocation2 + $0x448] sm:$0xff]  ;;  %v425_v43 = vrot.slane %v1485_v13, 4  ;;  %v350_v51 = vsel %vm329_vm3, %v347_v31, %v349_v45 }
  0xe4   :  { %868 = vmatmul.f32.gmra.mxu0 %v406_v48  ;;  %943 = vmatpush.msra.mxu3 %v635_v54  ;;  %v382_v52 = vsel %vm361_vm4, %v379_v32, %v381_v46  ;;  %v414_v53 = vsel %vm393_vm5, %v411_v33, %v413_v49  ;;  %v428_v54 = vrot.slane %v1506_v44, 4  ;;  %v521_v4 = vrot.slane %v1485_v13, 7  ;;  %v683_v33 = vld [vmem:[#allocation2 + $0x418] sm:$0xff] }
  0xe5   :  { %993 = vmatpush.msra.mxu1 %v648_v21  ;;  %1072 = vmatpush.msrb.mxu0 %v1602_v39  ;;  %v426_v39 = vrot.slane %v1489_v20, 4  ;;  %v432_v22 = vrot.slane %v1535_v23, 4  ;;  %v462_v25 = vrot.slane %v1524_v7, 5 }
  0xe6   :  { %944 = vmatpush.msra.mxu3 %v634_v0  ;;  %1201 = vmatpush.msra.mxu2 %v691_v29  ;;  %v489_v0 = vrot.slane %v1485_v13, 6  ;;  %v492_v13 = vrot.slane %v1506_v44, 6 }
  0xe7   :  { %1073 = vmatpush.msrb.mxu0 %v694_v59  ;;  %v427_v48 = vsel %vm294_vm1, %v425_v43, %v426_v39  ;;  %v490_v59 = vrot.slane %v1489_v20, 6  ;;  %v429_v61 = vsel %vm294_vm1, %v426_v39, %v428_v54  ;;  %v528_v39 = vrot.slane %v1535_v23, 7 }
  0xe8   :  { %733 = vmatmul.f32.gmra.mxu2 %v1608_v41  ;;  %945 = vmatpush.msra.mxu3 %v633_v5  ;;  %v459_v5 = vsel %vm456_vm6, %v457_v63, %v458_v56  ;;  %v468_v63 = vrot.slane %v1579_v18, 5 }
  0xe9   :  { %1074 = vmatpush.msrb.mxu0 %v693_v16  ;;  %1202 = vmatpush.msra.mxu2 %v690_v34  ;;  %v524_v16 = vrot.slane %v1506_v44, 7  ;;  %v493_v21 = vsel %vm488_vm7, %v490_v59, %v492_v13 }
  0xea   :  { %946 = vmatpush.msra.mxu3 %v632_v15  ;;  %v431_v15 = vsel %vm294_vm1, %v428_v54, %v430_v9  ;;  %v681_v54 = vld [vmem:[#allocation2 + $0x408] sm:$0xff] }
  0xeb   :  { %777 = vmatmul.f32.gmra.mxu3 %v344_v6  ;;  %824 = vmatmul.f32.gmra.mxu1 %v376_v8  ;;  %v491_v6 = vsel %vm488_vm7, %v489_v0, %v490_v59  ;;  %v523_v8 = vsel %vm520_vm8, %v521_v4, %v522_v62  ;;  %v525_v14 = vsel %vm520_vm8, %v522_v62, %v524_v16  ;;  %v680_v62 = vld [vmem:[#allocation2 + $0x400] sm:$0xff]  ;;  %v500_v0 = vrot.slane %v1579_v18, 6 }
  0xec   :  { %871 = vmatmul.f32.gmra.mxu0 %v408_v12  ;;  %1203 = vmatpush.msra.mxu2 %v689_v42  ;;  %v460_v12 = vrot.slane %v1506_v44, 5  ;;  %v532_v4 = vrot.slane %v1579_v18, 7 }
  0xed   :  { %1075 = vmatpush.msrb.mxu0 %v692_v24  ;;  %v684_v24 = vld [vmem:[#allocation2 + $0x420] sm:$0xff] }
  0xee   :  { %1204 = vmatpush.msra.mxu2 %v688_v57  ;;  %v461_v17 = vsel %vm456_vm6, %v458_v56, %v460_v12 }
  0xef   :  { %1076 = vmatpush.msrb.mxu0 %v691_v29  ;;  %v463_v29 = vsel %vm456_vm6, %v460_v12, %v462_v25  ;;  %v470_v12 = vrot.slane %v1608_v41, 5 }
  0xf0   :  { %736 = vmatmul.f32.gmra.mxu2 %v1655_v11 }
  0xf1   :  { %1077 = vmatpush.msrb.mxu0 %v690_v34  ;;  %1205 = vmatpush.msra.mxu2 %v687_v3  ;;  %v434_v34 = vrot.slane %v1561_v58, 4 }
  0xf3   :  { %780 = vmatmul.f32.gmra.mxu3 %v346_v26  ;;  %827 = vmatmul.f32.gmra.mxu1 %v378_v27  ;;  %v494_v26 = vrot.slane %v1524_v7, 6  ;;  %v433_v27 = vsel %vm294_vm1, %v430_v9, %v432_v22 }
  0xf4   :  { %874 = vmatmul.f32.gmra.mxu0 %v410_v28  ;;  %1206 = vmatpush.msra.mxu2 %v686_v10  ;;  %v526_v28 = vrot.slane %v1524_v7, 7 }
  0xf5   :  { %1078 = vmatpush.msrb.mxu0 %v689_v42  ;;  %v495_v31 = vsel %vm488_vm7, %v492_v13, %v494_v26  ;;  %v682_v42 = vld [vmem:[#allocation2 + $0x410] sm:$0xff]  ;;  %v502_v13 = vrot.slane %v1608_v41, 6 }
  0xf6   :  { %1207 = vmatpush.msra.mxu2 %v685_v2  ;;  %v527_v32 = vsel %vm520_vm8, %v524_v16, %v526_v28  ;;  %v529_v46 = vsel %vm520_vm8, %v526_v28, %v528_v39  ;;  %v534_v16 = vrot.slane %v1608_v41, 7  ;;  %v504_v28 = vrot.slane %v1655_v11, 6 }
  0xf7   :  { %1079 = vmatpush.msrb.mxu0 %v688_v57 }
  0xf8   :  { %739 = vmatmul.f32.gmra.mxu2 %v1592_v30 }
  0xf9   :  { %1080 = vmatpush.msrb.mxu0 %v687_v3  ;;  %1208 = vmatpush.msra.mxu2 %v684_v24 }
  0xfb   :  { %783 = vmatmul.f32.gmra.mxu3 %v348_v35  ;;  %830 = vmatmul.f32.gmra.mxu1 %v380_v37  ;;  %v464_v35 = vrot.slane %v1535_v23, 5  ;;  %v496_v37 = vrot.slane %v1535_v23, 6 }
  0xfc   :  { %877 = vmatmul.f32.gmra.mxu0 %v412_v38  ;;  %1209 = vmatpush.msra.mxu2 %v683_v33  ;;  %v435_v38 = vsel %vm294_vm1, %v432_v22, %v434_v34 }
  0xfd   :  { %1081 = vmatpush.msrb.mxu0 %v686_v10  ;;  %v465_v43 = vsel %vm456_vm6, %v462_v25, %v464_v35  ;;  %v497_v45 = vsel %vm488_vm7, %v494_v26, %v496_v37  ;;  %v440_v10 = vrot.slane %v1655_v11, 4  ;;  %v442_v25 = vrot.slane %v1592_v30, 4 }
  0xfe   :  { %1210 = vmatpush.msra.mxu2 %v682_v42 }
  0xff   :  { %1082 = vmatpush.msrb.mxu0 %v685_v2  ;;  %v471_v2 = vsel %vm456_vm6, %v468_v63, %v470_v12 }
 0x100   :  { %900 = vmatmul.f32.vlgmr.msrb.gmra.mxu2 %v427_v48  ;;  %v436_v48 = vrot.slane %v1579_v18, 4 }
 0x101   :  { %1083 = vmatpush.msrb.mxu0 %v684_v24  ;;  %1211 = vmatpush.msra.mxu2 %v681_v54  ;;  %v535_v24 = vsel %vm520_vm8, %v532_v4, %v534_v16 }
 0x102   :  { %v437_v49 = vsel %vm294_vm1, %v434_v34, %v436_v48 }
 0x103   :  { %786 = vmatmul.f32.gmra.mxu3 %v350_v51  ;;  %833 = vmatmul.f32.gmra.mxu1 %v382_v52  ;;  %v466_v51 = vrot.slane %v1561_v58, 5  ;;  %v498_v52 = vrot.slane %v1561_v58, 6 }
 0x104   :  { %880 = vmatmul.f32.gmra.mxu0 %v414_v53  ;;  %v530_v53 = vrot.slane %v1561_v58, 7  ;;  %1212 = vmatpush.msra.mxu2 %v680_v62 }
 0x105   :  { %1084 = vmatpush.msrb.mxu0 %v683_v33  ;;  %v467_v57 = vsel %vm456_vm6, %v464_v35, %v466_v51  ;;  %v499_v56 = vsel %vm488_vm7, %v496_v37, %v498_v52 }
 0x106   :  { %v531_v59 = vsel %vm520_vm8, %v528_v39, %v530_v53  ;;  %v533_v9 = vsel %vm520_vm8, %v530_v53, %v532_v4 }
 0x107   :  { %1085 = vmatpush.msrb.mxu0 %v682_v42 }
 0x108   :  { %903 = vmatmul.f32.gmra.mxu2 %v429_v61  ;;  %v438_v61 = vrot.slane %v1608_v41, 4 }
 0x109   :  { %1086 = vmatpush.msrb.mxu0 %v681_v54 }
 0x10a   :  { %v439_v3 = vsel %vm294_vm1, %v436_v48, %v438_v61 }
 0x10b   :  { %947 = vmatmul.f32.vlgmr.msra.gmra.mxu3 %v459_v5  ;;  %994 = vmatmul.f32.vlgmr.msra.gmra.mxu1 %v491_v6  ;;  %v469_v6 = vsel %vm456_vm6, %v466_v51, %v468_v63 }
 0x10c   :  { %1041 = vmatmul.f32.vlgmr.msra.gmra.mxu0 %v523_v8  ;;  %v501_v8 = vsel %vm488_vm7, %v498_v52, %v500_v0 }
 0x10d   :  { %1087 = vmatpush.msrb.mxu0 %v680_v62 }
 0x110   :  { %906 = vmatmul.f32.gmra.mxu2 %v431_v15  ;;  %v441_v15 = vsel %vm294_vm1, %v438_v61, %v440_v10 }
 0x113   :  { %950 = vmatmul.f32.gmra.mxu3 %v461_v17  ;;  %997 = vmatmul.f32.gmra.mxu1 %v493_v21 }
 0x114   :  { %1044 = vmatmul.f32.gmra.mxu0 %v525_v14  ;;  %v503_v14 = vsel %vm488_vm7, %v500_v0, %v502_v13 }
 0x118   :  { %909 = vmatmul.f32.gmra.mxu2 %v433_v27  ;;  %v472_v27 = vrot.slane %v1655_v11, 5 }
 0x11a   :  { %v473_v37 = vsel %vm456_vm6, %v470_v12, %v472_v27  ;;  %v475_v54 = vsel %vm456_vm6, %v472_v27, %v474_v40 }
 0x11b   :  { %953 = vmatmul.f32.gmra.mxu3 %v463_v29  ;;  %1000 = vmatmul.f32.gmra.mxu1 %v495_v31  ;;  %v443_v31 = vsel %vm294_vm1, %v440_v10, %v442_v25 }
 0x11c   :  { %1047 = vmatmul.f32.gmra.mxu0 %v527_v32  ;;  %v536_v32 = vrot.slane %v1655_v11, 7 }
 0x11e   :  { %v537_v42 = vsel %vm520_vm8, %v534_v16, %v536_v32 }
 0x120   :  { %912 = vmatmul.f32.gmra.mxu2 %v435_v38  ;;  %v505_v38 = vsel %vm488_vm7, %v502_v13, %v504_v28 }
 0x123   :  { %956 = vmatmul.f32.gmra.mxu3 %v465_v43  ;;  %1003 = vmatmul.f32.gmra.mxu1 %v497_v45  ;;  %v444_v43 = vrot.slane %v1599_v36, 4 }
 0x124   :  { %1050 = vmatmul.f32.gmra.mxu0 %v529_v46 }
 0x128   :  { %915 = vmatmul.f32.gmra.mxu2 %v437_v49  ;;  %v445_v49 = vsel %vm294_vm1, %v442_v25, %v444_v43 }
 0x12b   :  { %959 = vmatmul.f32.gmra.mxu3 %v467_v57  ;;  %1006 = vmatmul.f32.gmra.mxu1 %v499_v56  ;;  %v507_v57 = vsel %vm488_vm7, %v504_v28, %v506_v47  ;;  %v539_v56 = vsel %vm520_vm8, %v536_v32, %v538_v50 }
 0x12c   :  { %1053 = vmatmul.f32.gmra.mxu0 %v531_v59 }
 0x130   :  { %918 = vmatmul.f32.gmra.mxu2 %v439_v3 }
 0x132   :  { %v713_v5 = vpop.f32.mrf.mxu2 }
 0x133   :  { %962 = vmatmul.f32.gmra.mxu3 %v469_v6  ;;  %1009 = vmatmul.f32.gmra.mxu1 %v501_v8 }
 0x134   :  { %1056 = vmatmul.f32.gmra.mxu0 %v533_v9 }
 0x138   :  { %v807_v17 = vpop.f32.mrf.mxu1  ;;  %921 = vmatmul.f32.gmra.mxu2 %v441_v15 }
 0x139   :  { %v854_v21 = vpop.f32.mrf.mxu0 }
 0x13b   :  { %v716_v22 = vpop.f32.mrf.mxu2  ;;  %965 = vmatmul.f32.gmra.mxu3 %v471_v2  ;;  %1012 = vmatmul.f32.gmra.mxu1 %v503_v14 }
 0x13c   :  { %1059 = vmatmul.f32.gmra.mxu0 %v535_v24 }
 0x13e   :  { %v760_v26 = vpop.f32.mrf.mxu3 }
 0x13f   :  { %v761_v29 = vadd.f32 %v760_v26, %v713_v5 }
 0x140   :  { %v810_v33 = vpop.f32.mrf.mxu1  ;;  %924 = vmatmul.f32.gmra.mxu2 %v443_v31 }
 0x141   :  { %v808_v34 = vadd.f32 %v807_v17, %v761_v29  ;;  %v857_v35 = vpop.f32.mrf.mxu0 }
 0x143   :  { %v719_v39 = vpop.f32.mrf.mxu2  ;;  %968 = vmatmul.f32.gmra.mxu3 %v473_v37  ;;  %1015 = vmatmul.f32.gmra.mxu1 %v505_v38  ;;  %v1752_v45 = vadd.f32 %v854_v21, %v808_v34 }
 0x144   :  { %1062 = vmatmul.f32.gmra.mxu0 %v537_v42 }
 0x146   :  { %v763_v46 = vpop.f32.mrf.mxu3 }
 0x147   :  { %v764_v48 = vadd.f32 %v763_v46, %v716_v22 }
 0x148   :  { %v813_v51 = vpop.f32.mrf.mxu1  ;;  %927 = vmatmul.f32.gmra.mxu2 %v445_v49 }
 0x149   :  { %v811_v52 = vadd.f32 %v810_v33, %v764_v48  ;;  %v860_v53 = vpop.f32.mrf.mxu0 }
 0x14b   :  { %v722_v36 = vpop.f32.mrf.mxu2  ;;  %971 = vmatmul.f32.gmra.mxu3 %v475_v54  ;;  %1018 = vmatmul.f32.gmra.mxu1 %v507_v57  ;;  %v1764_v59 = vadd.f32 %v857_v35, %v811_v52 }
 0x14c   :  { %1065 = vmatmul.f32.gmra.mxu0 %v539_v56 }
 0x14e   :  { %v766_v61 = vpop.f32.mrf.mxu3 }
 0x14f   :  { %v767_v62 = vadd.f32 %v766_v61, %v719_v39 }
 0x150   :  { %v816_v63 = vpop.f32.mrf.mxu1  ;;  %1097 = vmatmul.f32.vlgmr.msra.gmra.mxu2 %v1535_v23 }
 0x151   :  { %v814_v40 = vadd.f32 %v813_v51, %v767_v62  ;;  %v863_v0 = vpop.f32.mrf.mxu0 }
 0x153   :  { %v725_v3 = vpop.f32.mrf.mxu2  ;;  %974 = vmatmul.f32.gmra.mxu3 %v1628_v55  ;;  %1021 = vmatmul.f32.gmra.mxu1 %v1633_v60  ;;  %v1769_v47 = vadd.f32 %v860_v53, %v814_v40 }
 0x154   :  { %1068 = vmatmul.f32.gmra.mxu0 %v1640_v1 }
 0x156   :  { %v769_v50 = vpop.f32.mrf.mxu3 }
 0x157   :  { %v770_v4 = vadd.f32 %v769_v50, %v722_v36 }
 0x158   :  { %v819_v5 = vpop.f32.mrf.mxu1  ;;  %1100 = vmatmul.f32.gmra.mxu2 %v1561_v58 }
 0x159   :  { %v817_v6 = vadd.f32 %v816_v63, %v770_v4  ;;  %v866_v8 = vpop.f32.mrf.mxu0 }
 0x15b   :  { %v728_v9 = vpop.f32.mrf.mxu2  ;;  %v1773_v23 = vadd.f32 %v863_v0, %v817_v6 }
 0x15c   :  { %1088 = vmatmul.f32.vlgmr.msrb.gmra.mxu0 %v1489_v20 }
 0x15e   :  { %v772_v10 = vpop.f32.mrf.mxu3 }
 0x15f   :  { %v773_v55 = vadd.f32 %v772_v10, %v725_v3 }
 0x160   :  { %v822_v12 = vpop.f32.mrf.mxu1  ;;  %1103 = vmatmul.f32.gmra.mxu2 %v1579_v18 }
 0x161   :  { %v820_v60 = vadd.f32 %v819_v5, %v773_v55  ;;  %v869_v13 = vpop.f32.mrf.mxu0 }
 0x163   :  { %v731_v1 = vpop.f32.mrf.mxu2  ;;  %v1777_v15 = vadd.f32 %v866_v8, %v820_v60 }
 0x164   :  { %1091 = vmatmul.f32.gmra.mxu0 %v1506_v44 }
 0x166   :  { %v775_v58 = vpop.f32.mrf.mxu3 }
 0x167   :  { %v776_v16 = vadd.f32 %v775_v58, %v728_v9 }
 0x168   :  { %v825_v17 = vpop.f32.mrf.mxu1  ;;  %1106 = vmatmul.f32.gmra.mxu2 %v1608_v41 }
 0x169   :  { %v823_v21 = vadd.f32 %v822_v12, %v776_v16  ;;  %v872_v2 = vpop.f32.mrf.mxu0 }
 0x16b   :  { %v734_v20 = vpop.f32.mrf.mxu2  ;;  %v1781_v14 = vadd.f32 %v869_v13, %v823_v21 }
 0x16c   :  { %1094 = vmatmul.f32.gmra.mxu0 %v1524_v7 }
 0x16e   :  { %v778_v18 = vpop.f32.mrf.mxu3 }
 0x16f   :  { %v779_v22 = vadd.f32 %v778_v18, %v731_v1 }
 0x170   :  { %v828_v24 = vpop.f32.mrf.mxu1  ;;  %1109 = vmatmul.f32.gmra.mxu2 %v1655_v11 }
 0x171   :  { %v826_v25 = vadd.f32 %v825_v17, %v779_v22  ;;  %v875_v26 = vpop.f32.mrf.mxu0 }
 0x173   :  { %v737_v44 = vpop.f32.mrf.mxu2  ;;  %v1785_v27 = vadd.f32 %v872_v2, %v826_v25 }
 0x176   :  { %v781_v28 = vpop.f32.mrf.mxu3 }
 0x177   :  { %v782_v29 = vadd.f32 %v781_v28, %v734_v20 }
 0x178   :  { %v831_v41 = vpop.f32.mrf.mxu1  ;;  %1112 = vmatmul.f32.gmra.mxu2 %v1592_v30 }
 0x179   :  { %v829_v31 = vadd.f32 %v828_v24, %v782_v29  ;;  %v878_v32 = vpop.f32.mrf.mxu0 }
 0x17b   :  { %v740_v33 = vpop.f32.mrf.mxu2  ;;  %v1788_v34 = vadd.f32 %v875_v26, %v829_v31 }
 0x17e   :  { %v784_v7 = vpop.f32.mrf.mxu3 }
 0x17f   :  { %v785_v35 = vadd.f32 %v784_v7, %v737_v44 }
 0x180   :  { %1180 = vmatmul.msk.f32.gmra.mxu2 %vm294_vm1, %v1581_v19  ;;  %v834_v38 = vpop.f32.mrf.mxu1 }
 0x181   :  { %v832_v11 = vadd.f32 %v831_v41, %v785_v35  ;;  %v881_v37 = vpop.f32.mrf.mxu0 }
 0x183   :  { %v901_v39 = vpop.f32.mrf.mxu2  ;;  %v1792_v42 = vadd.f32 %v878_v32, %v832_v11 }
 0x184   :  { %v902_v43 = vadd.f32 %v901_v39, %v1752_v45 }
 0x186   :  { %v787_v46 = vpop.f32.mrf.mxu3 }
 0x187   :  { %v788_v30 = vadd.f32 %v787_v46, %v740_v33 }
 0x188   :  { %v995_v53 = vpop.f32.mrf.mxu1 }
 0x189   :  { %v835_v48 = vadd.f32 %v834_v38, %v788_v30  ;;  %v1042_v49 = vpop.f32.mrf.mxu0 }
 0x18b   :  { %v904_v51 = vpop.f32.mrf.mxu2  ;;  %v1795_v52 = vadd.f32 %v881_v37, %v835_v48 }
 0x18c   :  { %v905_v54 = vadd.f32 %v904_v51, %v1764_v59 }
 0x18e   :  { %v948_v57 = vpop.f32.mrf.mxu3 }
 0x18f   :  { %v949_v19 = vadd.f32 %v948_v57, %v902_v43 }
 0x190   :  { %v998_v40 = vpop.f32.mrf.mxu1 }
 0x191   :  { %v996_v36 = vadd.f32 %v995_v53, %v949_v19  ;;  %v1045_v56 = vpop.f32.mrf.mxu0 }
 0x193   :  { %v907_v61 = vpop.f32.mrf.mxu2  ;;  %v1043_v62 = vadd.f32 %v1042_v49, %v996_v36 }
 0x194   :  { %v908_v63 = vadd.f32 %v907_v61, %v1769_v47 }
 0x196   :  { %v951_v45 = vpop.f32.mrf.mxu3 }
 0x197   :  { %v952_v0 = vadd.f32 %v951_v45, %v905_v54 }
 0x198   :  { %v1001_v9 = vpop.f32.mrf.mxu1 }
 0x199   :  { %v999_v3 = vadd.f32 %v998_v40, %v952_v0  ;;  %v1048_v50 = vpop.f32.mrf.mxu0 }
 0x19b   :  { %v910_v4 = vpop.f32.mrf.mxu2  ;;  %v1046_v5 = vadd.f32 %v1045_v56, %v999_v3 }
 0x19c   :  { %v911_v22 = vadd.f32 %v910_v4, %v1773_v23 }
 0x19e   :  { %v954_v6 = vpop.f32.mrf.mxu3 }
 0x19f   :  { %v955_v8 = vadd.f32 %v954_v6, %v908_v63 }
 0x1a0   :  { %v1004_v21 = vpop.f32.mrf.mxu1 }
 0x1a1   :  { %v1002_v10 = vadd.f32 %v1001_v9, %v955_v8  ;;  %v1051_v59 = vpop.f32.mrf.mxu0 }
 0x1a3   :  { %v913_v55 = vpop.f32.mrf.mxu2  ;;  %v1799_v12 = vadd.f32 %v1048_v50, %v1002_v10 }
 0x1a4   :  { %v914_v41 = vadd.f32 %v913_v55, %v1777_v15 }
 0x1a6   :  { %v957_v16 = vpop.f32.mrf.mxu3 }
 0x1a7   :  { %v958_v25 = vadd.f32 %v957_v16, %v911_v22 }
 0x1a8   :  { %v1007_v26 = vpop.f32.mrf.mxu1 }
 0x1a9   :  { %v1054_v60 = vpop.f32.mrf.mxu0  ;;  %v1005_v28 = vadd.f32 %v1004_v21, %v958_v25 }
 0x1ab   :  { %v916_v13 = vpop.f32.mrf.mxu2  ;;  %v1052_v33 = vadd.f32 %v1051_v59, %v1005_v28 }
 0x1ac   :  { %v917_v23 = vadd.f32 %v916_v13, %v1781_v14 }
 0x1ae   :  { %v960_v18 = vpop.f32.mrf.mxu3 }
 0x1af   :  { %v961_v32 = vadd.f32 %v960_v18, %v914_v41 }
 0x1b0   :  { %v1010_v11 = vpop.f32.mrf.mxu1 }
 0x1b1   :  { %v1057_v1 = vpop.f32.mrf.mxu0  ;;  %v1008_v37 = vadd.f32 %v1007_v26, %v961_v32 }
 0x1b3   :  { %v919_v58 = vpop.f32.mrf.mxu2  ;;  %v1055_v49 = vadd.f32 %v1054_v60, %v1008_v37 }
 0x1b4   :  { %v920_v56 = vadd.f32 %v919_v58, %v1785_v27 }
 0x1b6   :  { %v963_v29 = vpop.f32.mrf.mxu3 }
 0x1b7   :  { %v964_v30 = vadd.f32 %v963_v29, %v917_v23 }
 0x1b8   :  { %v1013_v36 = vpop.f32.mrf.mxu1 }
 0x1b9   :  { %v1060_v47 = vpop.f32.mrf.mxu0  ;;  %v1011_v54 = vadd.f32 %v1010_v11, %v964_v30 }
 0x1bb   :  { %v922_v17 = vpop.f32.mrf.mxu2  ;;  %v1058_v45 = vadd.f32 %v1057_v1, %v1011_v54 }
 0x1bc   :  { %v923_v9 = vadd.f32 %v922_v17, %v1788_v34 }
 0x1be   :  { %v966_v43 = vpop.f32.mrf.mxu3 }
 0x1bf   :  { %v967_v14 = vadd.f32 %v966_v43, %v920_v56 }
 0x1c0   :  { %v1016_v59 = vpop.f32.mrf.mxu1 }
 0x1c1   :  { %v1801_v2 = vpop.f32.mrf.mxu0  ;;  %v1014_v4 = vadd.f32 %v1013_v36, %v967_v14 }
 0x1c3   :  { %v1803_v20 = vpop.f32.mrf.mxu2  ;;  %v1061_v13 = vadd.f32 %v1060_v47, %v1014_v4 }
 0x1c4   :  { %v926_v25 = vadd.f32 %v1803_v20, %v1792_v42 }
 0x1c6   :  { %v969_v0 = vpop.f32.mrf.mxu3 }
 0x1c7   :  { %v970_v55 = vadd.f32 %v969_v0, %v923_v9 }
 0x1c8   :  { %v1019_v28 = vpop.f32.mrf.mxu1 }
 0x1c9   :  { %v1806_v24 = vpop.f32.mrf.mxu0  ;;  %v1017_v21 = vadd.f32 %v1016_v59, %v970_v55 }
 0x1cb   :  { %v1808_v44 = vpop.f32.mrf.mxu2  ;;  %v1064_v26 = vadd.f32 %v1801_v2, %v1017_v21 }
 0x1ce   :  { %v972_v16 = vpop.f32.mrf.mxu3 }
 0x1cf   :  { %v973_v17 = vadd.f32 %v972_v16, %v926_v25 }
 0x1d0   :  { %v1022_v37 = vpop.f32.mrf.mxu1 }
 0x1d1   :  { %v1811_v31 = vpop.f32.mrf.mxu0  ;;  %v1020_v47 = vadd.f32 %v1019_v28, %v973_v17 }
 0x1d3   :  { %v1098_v7 = vpop.f32.mrf.mxu2  ;;  %v1067_v42 = vadd.f32 %v1806_v24, %v1020_v47 }
 0x1d4   :  { %v1099_v35 = vadd.f32 %v1098_v7, %v1052_v33  ;;  %v929_v33 = vadd.f32 %v1808_v44, %v1795_v52 }
 0x1d6   :  { %v1122_v38 = vmax.f32 %v1099_v35, 0.0  ;;  %v975_v32 = vpop.f32.mrf.mxu3 }
 0x1d7   :  { %v976_v35 = vadd.f32 %v975_v32, %v929_v33 }
 0x1d8   :  { %v1132_v39 = vadd.f32 42.0, %v1122_v38 }
 0x1d9   :  { %v1089_v46 = vpop.f32.mrf.mxu0  ;;  %v1023_v38 = vadd.f32 %v1022_v37, %v976_v35 }
 0x1da   :  { %1142 = vst [vmem:[#allocation5 + $0x18] sm:$0xff] %v1132_v39  ;;  %v1090_v48 = vadd.f32 %v1089_v46, %v1043_v62 }
 0x1db   :  { %v1101_v51 = vpop.f32.mrf.mxu2  ;;  %v1070_v39 = vadd.f32 %v1811_v31, %v1023_v38 }
 0x1dc   :  { %v1119_v15 = vmax.f32 %v1090_v48, 0.0  ;;  %v1102_v53 = vadd.f32 %v1101_v51, %v1055_v49 }
 0x1de   :  { %v1129_v57 = vadd.f32 42.0, %v1119_v15  ;;  %v1123_v19 = vmax.f32 %v1102_v53, 0.0 }
 0x1e0   :  { %1139 = vst [vmem:[#allocation5] sm:$0xff] %v1129_v57  ;;  %v1133_v61 = vadd.f32 42.0, %v1123_v19 }
 0x1e1   :  { %v1092_v63 = vpop.f32.mrf.mxu0 }
 0x1e2   :  { %1143 = vst [vmem:[#allocation5 + $0x20] sm:$0xff] %v1133_v61  ;;  %v1093_v40 = vadd.f32 %v1092_v63, %v1046_v5 }
 0x1e3   :  { %v1104_v3 = vpop.f32.mrf.mxu2 }
 0x1e4   :  { %v1120_v62 = vmax.f32 %v1093_v40, 0.0  ;;  %v1105_v50 = vadd.f32 %v1104_v3, %v1058_v45 }
 0x1e6   :  { %v1130_v6 = vadd.f32 42.0, %v1120_v62  ;;  %v1124_v8 = vmax.f32 %v1105_v50, 0.0 }
 0x1e8   :  { %1140 = vst [vmem:[#allocation5 + $0x8] sm:$0xff] %v1130_v6  ;;  %v1134_v10 = vadd.f32 42.0, %v1124_v8 }
 0x1e9   :  { %v1095_v27 = vpop.f32.mrf.mxu0 }
 0x1ea   :  { %1144 = vst [vmem:[#allocation5 + $0x28] sm:$0xff] %v1134_v10  ;;  %v1096_v60 = vadd.f32 %v1095_v27, %v1799_v12 }
 0x1eb   :  { %v1107_v5 = vpop.f32.mrf.mxu2 }
 0x1ec   :  { %v1121_v1 = vmax.f32 %v1096_v60, 0.0  ;;  %v1108_v58 = vadd.f32 %v1107_v5, %v1061_v13 }
 0x1ee   :  { %v1131_v18 = vadd.f32 42.0, %v1121_v1  ;;  %v1125_v22 = vmax.f32 %v1108_v58, 0.0 }
 0x1f0   :  { %1141 = vst [vmem:[#allocation5 + $0x10] sm:$0xff] %v1131_v18  ;;  %v1135_v34 = vadd.f32 42.0, %v1125_v22 }
 0x1f2   :  { %1145 = vst [vmem:[#allocation5 + $0x30] sm:$0xff] %v1135_v34 }
 0x1f3   :  { %v1110_v29 = vpop.f32.mrf.mxu2 }
 0x1f4   :  { %v1111_v12 = vadd.f32 %v1110_v29, %v1064_v26 }
 0x1f6   :  { %v1126_v41 = vmax.f32 %v1111_v12, 0.0 }
 0x1f8   :  { %v1136_v7 = vadd.f32 42.0, %v1126_v41 }
 0x1fa   :  { %1146 = vst [vmem:[#allocation5 + $0x38] sm:$0xff] %v1136_v7 }
 0x1fb   :  { %v1113_v20 = vpop.f32.mrf.mxu2 }
 0x1fc   :  { %v1114_v11 = vadd.f32 %v1113_v20, %v1067_v42 }
 0x1fe   :  { %v1127_v23 = vmax.f32 %v1114_v11, 0.0 }
 0x200   :  { %v1137_v2 = vadd.f32 42.0, %v1127_v23 }
 0x202   :  { %1147 = vst [vmem:[#allocation5 + $0x40] sm:$0xff] %v1137_v2 }
 0x203   :  { %v1116_v43 = vpop.f32.mrf.mxu2 }
 0x204   :  { %v1117_v46 = vadd.f32 %v1116_v43, %v1070_v39 }
 0x206   :  { %v1128_v52 = vmax.f32 %v1117_v46, 0.0 }
 0x208   :  { %v1138_v44 = vadd.f32 42.0, %v1128_v52 }
 0x20a   :  { %1148 = vst [vmem:[#allocation5 + $0x48] sm:$0xff] %v1138_v44 }
 0x20b   :  { %1161 = dma.vmem_to_hbm [thread:$0]  %s1154_s21, 1280, %s1156_s26, [#allocation4], %s1275_s23, %s1275_s23, %s1276_s24  }
 0x20c   :  { %1272 = dma.done.wait [#allocation4], 1280  }
 0x20d   :  { %1273 = vsyncadd [#allocation4], 4294966016 }
 0x20e   :  { %1166 = vsyncpa [#allocation3], 1 }
 0x20f   :  { %1167 = vsyncpa [#allocation4], 1 }

</bundles_post_ra>
